<compile_context>
chip_gen: v7x
topology: tpu7x:2x2x1
jax: 0.10.0
libtpu: 0.0.40
codegen_flags: <defaults>
</compile_context>

<pallas_src>
import numpy as np
import jax
import jax.numpy as jnp
from jax.experimental import pallas as pl
from jax.experimental.pallas import tpu as pltpu


def _largest_divisor(n, limit, multiple):
    """Largest divisor of n that is <= limit and a multiple of `multiple` (or None)."""
    best = None
    limit = min(limit, n)
    d = multiple
    while d <= limit:
        if n % d == 0:
            best = d
        d += multiple
    return best


def _make_reorg_kernel(tm, W, s, tc):
    """Per-(batch, ab-tile) copy kernel for static (tile rows tm, width W, stride s)."""
    Wp = W // s
    n_chunks = tm // tc

    def kernel(x_ref, o_ref):
        # x_ref: (tm, s*s*W)    [ab, (d*s + q)*W + (e'*s + f)]
        # o_ref: (s*s, tm, W)   [d*s + f, ab, q*Wp + e']
        for c in range(n_chunks):          # bound live vregs: tc rows at a time
            r0 = c * tc
            for d in range(s):
                for q in range(s):
                    # One contiguous, full-width load per (chunk, d, q);
                    # reused for every f (hoisted out of the f loop).
                    rows = x_ref[pl.ds(r0, tc), pl.ds((d * s + q) * W, W)]  # (tc, W)
                    r3 = rows.reshape(tc, Wp, s)                            # (ab, e', f)
                    for f in range(s):
                        # direct per-q-part store, no concatenate
                        o_ref[d * s + f, pl.ds(r0, tc), pl.ds(q * Wp, Wp)] = r3[:, :, f]

    return kernel


def reorg(x, stride=2, *, tile_bytes=1 << 20, chunk_bytes=64 << 10):
    """Pallas implementation of Reorg.forward for NCHW input."""
    if x.ndim != 4:
        raise ValueError(f"expected 4-D NCHW input, got shape {x.shape}")
    B, C, H, W = x.shape
    s = int(stride)
    if H % s != 0:
        raise ValueError(f"Dimension mismatch: {H} is not divisible by {s}")
    if W % s != 0:
        raise ValueError(f"Dimension mismatch: {W} is not divisible by {s}")
    if C % (s * s) != 0:
        raise ValueError(f"Channels {C} not divisible by stride**2 = {s * s}")

    M = (C * H) // (s * s)                 # rows per (d, f) output slab
    itemsize = np.dtype(x.dtype).itemsize

    # --- DMA tile over the ab axis (aim ~tile_bytes per block) ---------------
    tm_limit = max(1, tile_bytes // (s * s * W * itemsize))
    tm = _largest_divisor(M, tm_limit, 8)
    if tm is None:                         # M < 8 or no multiple-of-8 divisor fits
        tm = M                             # full-M block (block dim == array dim)

    # --- in-kernel chunk size so live values stay well under the vreg file ---
    tc_limit = max(1, chunk_bytes // (W * itemsize))
    tc = (_largest_divisor(tm, tc_limit, 8)
          or _largest_divisor(tm, tc_limit, 1)
          or tm)

    # glue: contiguous regroup, no data movement
    x3 = x.reshape(B, M, s * s * W)

    bytes_accessed = 2 * B * C * H * W * itemsize
    out4 = pl.pallas_call(
        _make_reorg_kernel(tm, W, s, tc),
        out_shape=jax.ShapeDtypeStruct((B, s * s, M, W), x.dtype),
        grid=(B, M // tm),
        in_specs=[pl.BlockSpec((None, tm, s * s * W), lambda b, i: (b, i, 0))],
        out_specs=pl.BlockSpec((None, s * s, tm, W), lambda b, i: (b, 0, i, 0)),
        compiler_params=pltpu.CompilerParams(
            dimension_semantics=("parallel", "parallel"),
            vmem_limit_bytes=32 * 1024 * 1024),
        cost_estimate=pl.CostEstimate(
            flops=0, transcendentals=0, bytes_accessed=bytes_accessed),
    )(x3)

    # glue: contiguous regroup to the final (B, C*s*s, H//s, W//s) shape
    return out4.reshape(B, C * s * s, H // s, W // s)


def reorg_reference(x, stride=2):
    """Pure-JAX mirror of the PyTorch forward (view/permute/view)."""
    B, C, H, W = x.shape
    s = stride
    x6 = x.reshape(B, C // (s * s), H, s, W, s)
    x6 = jnp.transpose(x6, (0, 3, 5, 1, 2, 4))
    return x6.reshape(B, -1, H // s, W // s)


if __name__ == "__main__":
    key = jax.random.PRNGKey(0)

    # Primary case (matches the module's typical usage, small shapes).
    B, C, H, W = 2, 4, 16, 16
    x = jax.random.normal(key, (B, C, H, W), dtype=jnp.float32)
    out = jax.block_until_ready(reorg(x, stride=2))
    ref = reorg_reference(x, stride=2)
    assert out.shape == (B, C * 4, H // 2, W // 2), out.shape
    np.testing.assert_allclose(np.asarray(out), np.asarray(ref), rtol=0, atol=0)

    # Non-square spatial dims (H != W), stride=2.
    x_ns = jax.random.normal(jax.random.PRNGKey(1), (2, 16, 8, 12),
                             dtype=jnp.float32)
    out_ns = jax.block_until_ready(reorg(x_ns, stride=2))
    np.testing.assert_allclose(np.asarray(out_ns),
                               np.asarray(reorg_reference(x_ns, stride=2)),
                               rtol=0, atol=0)

    # Larger stride (stride=4).
    x_s4 = jax.random.normal(jax.random.PRNGKey(2), (2, 16, 8, 16),
                             dtype=jnp.float32)
    out_s4 = jax.block_until_ready(reorg(x_s4, stride=4))
    np.testing.assert_allclose(np.asarray(out_s4),
                               np.asarray(reorg_reference(x_s4, stride=4)),
                               rtol=0, atol=0)

    # Sub-32-bit dtype coverage (bf16): pure copy, must be bit-exact.
    x_bf = jax.random.normal(jax.random.PRNGKey(3), (2, 8, 16, 16),
                             dtype=jnp.float32).astype(jnp.bfloat16)
    out_bf = jax.block_until_ready(reorg(x_bf, stride=2))
    np.testing.assert_allclose(
        np.asarray(out_bf, dtype=np.float32),
        np.asarray(reorg_reference(x_bf, stride=2), dtype=np.float32),
        rtol=0, atol=0)

    print("KERNEL_OK")
</pallas_src>

<mosaic_0001>
module attributes {stable_mosaic.version = 11 : i64} {
  func.func @kernel(%arg0: i32, %arg1: i32, %arg2: memref<1x16x64xf32, #tpu.memory_space<vmem>>, %arg3: memref<1x4x16x16xf32, #tpu.memory_space<vmem>>) attributes {dimension_semantics = [#tpu.dimension_semantics<parallel>, #tpu.dimension_semantics<parallel>], iteration_bounds = array<i64: 2, 1>, scalar_prefetch = 0 : i64, scratch_operands = 0 : i64, tpu.core_type = #tpu.core_type<tc>, window_params = [{transform_indices = @transform_0, window_bounds = array<i64: 1, 16, 64>}, {transform_indices = @transform_1, window_bounds = array<i64: 1, 4, 16, 16>}]} {
    %c0 = arith.constant 0 : index
    %c0_0 = arith.constant 0 : index
    %c0_1 = arith.constant 0 : index
    %0 = vector.load %arg2[%c0, %c0_0, %c0_1] : memref<1x16x64xf32, #tpu.memory_space<vmem>>, vector<1x16x16xf32>
    %1 = vector.shape_cast %0 : vector<1x16x16xf32> to vector<16x16xf32>
    %2 = vector.shape_cast %1 : vector<16x16xf32> to vector<16x8x2xf32>
    %3 = vector.extract_strided_slice %2 {offsets = [0, 0, 0], sizes = [16, 8, 1], strides = [1, 1, 1]} : vector<16x8x2xf32> to vector<16x8x1xf32>
    %4 = vector.shape_cast %3 : vector<16x8x1xf32> to vector<16x8xf32>
    %c0_2 = arith.constant 0 : index
    %c0_3 = arith.constant 0 : index
    %c0_4 = arith.constant 0 : index
    %c0_5 = arith.constant 0 : index
    %5 = vector.load %arg3[%c0_2, %c0_3, %c0_4, %c0_5] : memref<1x4x16x16xf32, #tpu.memory_space<vmem>>, vector<1x1x16x8xf32>
    %6 = vector.shape_cast %5 : vector<1x1x16x8xf32> to vector<16x8xf32>
    %7 = vector.shape_cast %4 : vector<16x8xf32> to vector<1x1x16x8xf32>
    tpu.vector_store %arg3[%c0_2, %c0_3, %c0_4, %c0_5], %7 {strides = array<i32>} : memref<1x4x16x16xf32, #tpu.memory_space<vmem>>, vector<1x1x16x8xf32>,
    %8 = vector.extract_strided_slice %2 {offsets = [0, 0, 1], sizes = [16, 8, 1], strides = [1, 1, 1]} : vector<16x8x2xf32> to vector<16x8x1xf32>
    %9 = vector.shape_cast %8 : vector<16x8x1xf32> to vector<16x8xf32>
    %c0_6 = arith.constant 0 : index
    %c1 = arith.constant 1 : index
    %c0_7 = arith.constant 0 : index
    %c0_8 = arith.constant 0 : index
    %10 = vector.load %arg3[%c0_6, %c1, %c0_7, %c0_8] : memref<1x4x16x16xf32, #tpu.memory_space<vmem>>, vector<1x1x16x8xf32>
    %11 = vector.shape_cast %10 : vector<1x1x16x8xf32> to vector<16x8xf32>
    %12 = vector.shape_cast %9 : vector<16x8xf32> to vector<1x1x16x8xf32>
    tpu.vector_store %arg3[%c0_6, %c1, %c0_7, %c0_8], %12 {strides = array<i32>} : memref<1x4x16x16xf32, #tpu.memory_space<vmem>>, vector<1x1x16x8xf32>,
    %c0_9 = arith.constant 0 : index
    %c0_10 = arith.constant 0 : index
    %c16 = arith.constant 16 : index
    %13 = vector.load %arg2[%c0_9, %c0_10, %c16] : memref<1x16x64xf32, #tpu.memory_space<vmem>>, vector<1x16x16xf32>
    %14 = vector.shape_cast %13 : vector<1x16x16xf32> to vector<16x16xf32>
    %15 = vector.shape_cast %14 : vector<16x16xf32> to vector<16x8x2xf32>
    %16 = vector.extract_strided_slice %15 {offsets = [0, 0, 0], sizes = [16, 8, 1], strides = [1, 1, 1]} : vector<16x8x2xf32> to vector<16x8x1xf32>
    %17 = vector.shape_cast %16 : vector<16x8x1xf32> to vector<16x8xf32>
    %c0_11 = arith.constant 0 : index
    %c0_12 = arith.constant 0 : index
    %c0_13 = arith.constant 0 : index
    %c8 = arith.constant 8 : index
    %18 = vector.load %arg3[%c0_11, %c0_12, %c0_13, %c8] : memref<1x4x16x16xf32, #tpu.memory_space<vmem>>, vector<1x1x16x8xf32>
    %19 = vector.shape_cast %18 : vector<1x1x16x8xf32> to vector<16x8xf32>
    %20 = vector.shape_cast %17 : vector<16x8xf32> to vector<1x1x16x8xf32>
    tpu.vector_store %arg3[%c0_11, %c0_12, %c0_13, %c8], %20 {strides = array<i32>} : memref<1x4x16x16xf32, #tpu.memory_space<vmem>>, vector<1x1x16x8xf32>,
    %21 = vector.extract_strided_slice %15 {offsets = [0, 0, 1], sizes = [16, 8, 1], strides = [1, 1, 1]} : vector<16x8x2xf32> to vector<16x8x1xf32>
    %22 = vector.shape_cast %21 : vector<16x8x1xf32> to vector<16x8xf32>
    %c0_14 = arith.constant 0 : index
    %c1_15 = arith.constant 1 : index
    %c0_16 = arith.constant 0 : index
    %c8_17 = arith.constant 8 : index
    %23 = vector.load %arg3[%c0_14, %c1_15, %c0_16, %c8_17] : memref<1x4x16x16xf32, #tpu.memory_space<vmem>>, vector<1x1x16x8xf32>
    %24 = vector.shape_cast %23 : vector<1x1x16x8xf32> to vector<16x8xf32>
    %25 = vector.shape_cast %22 : vector<16x8xf32> to vector<1x1x16x8xf32>
    tpu.vector_store %arg3[%c0_14, %c1_15, %c0_16, %c8_17], %25 {strides = array<i32>} : memref<1x4x16x16xf32, #tpu.memory_space<vmem>>, vector<1x1x16x8xf32>,
    %c0_18 = arith.constant 0 : index
    %c0_19 = arith.constant 0 : index
    %c32 = arith.constant 32 : index
    %26 = vector.load %arg2[%c0_18, %c0_19, %c32] : memref<1x16x64xf32, #tpu.memory_space<vmem>>, vector<1x16x16xf32>
    %27 = vector.shape_cast %26 : vector<1x16x16xf32> to vector<16x16xf32>
    %28 = vector.shape_cast %27 : vector<16x16xf32> to vector<16x8x2xf32>
    %29 = vector.extract_strided_slice %28 {offsets = [0, 0, 0], sizes = [16, 8, 1], strides = [1, 1, 1]} : vector<16x8x2xf32> to vector<16x8x1xf32>
    %30 = vector.shape_cast %29 : vector<16x8x1xf32> to vector<16x8xf32>
    %c0_20 = arith.constant 0 : index
    %c2 = arith.constant 2 : index
    %c0_21 = arith.constant 0 : index
    %c0_22 = arith.constant 0 : index
    %31 = vector.load %arg3[%c0_20, %c2, %c0_21, %c0_22] : memref<1x4x16x16xf32, #tpu.memory_space<vmem>>, vector<1x1x16x8xf32>
    %32 = vector.shape_cast %31 : vector<1x1x16x8xf32> to vector<16x8xf32>
    %33 = vector.shape_cast %30 : vector<16x8xf32> to vector<1x1x16x8xf32>
    tpu.vector_store %arg3[%c0_20, %c2, %c0_21, %c0_22], %33 {strides = array<i32>} : memref<1x4x16x16xf32, #tpu.memory_space<vmem>>, vector<1x1x16x8xf32>,
    %34 = vector.extract_strided_slice %28 {offsets = [0, 0, 1], sizes = [16, 8, 1], strides = [1, 1, 1]} : vector<16x8x2xf32> to vector<16x8x1xf32>
    %35 = vector.shape_cast %34 : vector<16x8x1xf32> to vector<16x8xf32>
    %c0_23 = arith.constant 0 : index
    %c3 = arith.constant 3 : index
    %c0_24 = arith.constant 0 : index
    %c0_25 = arith.constant 0 : index
    %36 = vector.load %arg3[%c0_23, %c3, %c0_24, %c0_25] : memref<1x4x16x16xf32, #tpu.memory_space<vmem>>, vector<1x1x16x8xf32>
    %37 = vector.shape_cast %36 : vector<1x1x16x8xf32> to vector<16x8xf32>
    %38 = vector.shape_cast %35 : vector<16x8xf32> to vector<1x1x16x8xf32>
    tpu.vector_store %arg3[%c0_23, %c3, %c0_24, %c0_25], %38 {strides = array<i32>} : memref<1x4x16x16xf32, #tpu.memory_space<vmem>>, vector<1x1x16x8xf32>,
    %c0_26 = arith.constant 0 : index
    %c0_27 = arith.constant 0 : index
    %c48 = arith.constant 48 : index
    %39 = vector.load %arg2[%c0_26, %c0_27, %c48] : memref<1x16x64xf32, #tpu.memory_space<vmem>>, vector<1x16x16xf32>
    %40 = vector.shape_cast %39 : vector<1x16x16xf32> to vector<16x16xf32>
    %41 = vector.shape_cast %40 : vector<16x16xf32> to vector<16x8x2xf32>
    %42 = vector.extract_strided_slice %41 {offsets = [0, 0, 0], sizes = [16, 8, 1], strides = [1, 1, 1]} : vector<16x8x2xf32> to vector<16x8x1xf32>
    %43 = vector.shape_cast %42 : vector<16x8x1xf32> to vector<16x8xf32>
    %c0_28 = arith.constant 0 : index
    %c2_29 = arith.constant 2 : index
    %c0_30 = arith.constant 0 : index
    %c8_31 = arith.constant 8 : index
    %44 = vector.load %arg3[%c0_28, %c2_29, %c0_30, %c8_31] : memref<1x4x16x16xf32, #tpu.memory_space<vmem>>, vector<1x1x16x8xf32>
    %45 = vector.shape_cast %44 : vector<1x1x16x8xf32> to vector<16x8xf32>
    %46 = vector.shape_cast %43 : vector<16x8xf32> to vector<1x1x16x8xf32>
    tpu.vector_store %arg3[%c0_28, %c2_29, %c0_30, %c8_31], %46 {strides = array<i32>} : memref<1x4x16x16xf32, #tpu.memory_space<vmem>>, vector<1x1x16x8xf32>,
    %47 = vector.extract_strided_slice %41 {offsets = [0, 0, 1], sizes = [16, 8, 1], strides = [1, 1, 1]} : vector<16x8x2xf32> to vector<16x8x1xf32>
    %48 = vector.shape_cast %47 : vector<16x8x1xf32> to vector<16x8xf32>
    %c0_32 = arith.constant 0 : index
    %c3_33 = arith.constant 3 : index
    %c0_34 = arith.constant 0 : index
    %c8_35 = arith.constant 8 : index
    %49 = vector.load %arg3[%c0_32, %c3_33, %c0_34, %c8_35] : memref<1x4x16x16xf32, #tpu.memory_space<vmem>>, vector<1x1x16x8xf32>
    %50 = vector.shape_cast %49 : vector<1x1x16x8xf32> to vector<16x8xf32>
    %51 = vector.shape_cast %48 : vector<16x8xf32> to vector<1x1x16x8xf32>
    tpu.vector_store %arg3[%c0_32, %c3_33, %c0_34, %c8_35], %51 {strides = array<i32>} : memref<1x4x16x16xf32, #tpu.memory_space<vmem>>, vector<1x1x16x8xf32>,
    return
  }
  func.func @transform_0(%arg0: i32, %arg1: i32) -> (i32, i32, i32) {
    %c0_i32 = arith.constant 0 : i32
    %c0_i32_0 = arith.constant 0 : i32
    return %arg0, %arg1, %c0_i32 : i32, i32, i32
  }
  func.func @transform_1(%arg0: i32, %arg1: i32) -> (i32, i32, i32, i32) {
    %c0_i32 = arith.constant 0 : i32
    %c0_i32_0 = arith.constant 0 : i32
    %c0_i32_1 = arith.constant 0 : i32
    return %arg0, %c0_i32, %arg1, %c0_i32_0 : i32, i32, i32, i32
  }
}

</mosaic_0001>

<bundles_post_ra>
// kernel: tpu_custom_call.1
= control target key start
LH: loop header
LB: loop body
LE: loop exit
PB: predicated region body
PF: predicated region fallthrough
CT: control target
= control target key end

     0   :  { %6 = vsyncpa [#allocation3], 0  ;;  %s4114_s0 = inlined_call_operand.hbm [shape: f32[2,16,64], index: 0, kind: input, shape index: {}]   ;;  %s4115_s1 = inlined_call_operand.hbm [shape: f32[2,4,16,16], index: 1, kind: output, shape index: {}]  }
   0x1   :  { %8 = vsyncpa [#allocation3 + $0x1], 0 }
   0x2   :  { %9 = vsyncpa [#allocation4], 0 }
   0x3   :  { %11 = vsyncpa [#allocation4 + $0x1], 0  ;;  %s3014_s6 = smov 0   ;;  %s3016_s7 = smov 0  }
   0x4   :  { %s3018_s8 = smov 0   ;;  %s3020_s9 = smov 0  }
   0x5   :  { %s3022_s10 = smov 0   ;;  %s3024_s11 = smov 0  }
   0x6 LB: > { %s2751_s12 = sadd.s32 4294967295, %s2982_s11   ;;  %s2752_s13 = sadd.s32 4294967294, %s2982_s11   ;;  %s2982_s11 = sphi %s3024_s11, %s17_s11   ;;  %s2978_s10 = sphi %s3022_s10, %s4179_s10   ;;  %s2974_s9 = sphi %s3020_s9, %s4178_s9   ;;  %s2970_s8 = sphi %s3018_s8, %s4177_s8   ;;  %s2966_s7 = sphi %s3016_s7, %s4176_s7   ;;  %s2962_s6 = sphi %s3014_s6, %s4175_s6  }
   0x7   : > { %s29_s14 = sadd.s32 1, %s2978_s10  ;;  %s38_s15 = sadd.s32 1, %s2970_s8 }
   0x8   : > { %p31_p0 = scmp.ge.s32.totalorder %s29_s14, 2  ;;  %p45_p1 = scmp.ne.s32.totalorder %s2970_s8, %s2966_s7 }
   0x9   : > { %p46_p2 = scmp.eq.s32.totalorder %s2982_s11, 0  ;;  %p51_p3 = scmp.ne.s32.totalorder %s2966_s7, %s2962_s6 }
   0xa   : > { %s4181_s14 = smov (%p31_p0, %s29_s14), 0  ;;  %p52_p5 = scmp.eq.s32.totalorder %s2751_s12, 0 }
   0xb   : > { %p3055_p4 = por %p46_p2, %p45_p1  ;;  %s33_s17 = ssub.s32 %s2978_s10, %s4181_s14 }
   0xc   : > { %p77_p6 = scmp.eq.s32.totalorder %s2751_s12, 1  ;;  %p36_p7 = scmp.eq.s32.totalorder %s33_s17, 0 }
   0xd   : > { %p3061_p8 = por %p52_p5, %p51_p3  ;;  %p83_p10 = scmp.eq.s32.totalorder %s2752_s13, 1 }
   0xe   : > { %p3065_p9 = por %p77_p6, %p45_p1  ;;  %p2792_p13 = scmp.lt.s32.totalorder %s2982_s11, 2 }
   0xf   : > { %s3070_s20 = scalar_select %p36_p7, %s2970_s8, %s38_s15  }
  0x10   : > { %s4122_s19 = scalar_select %p3065_p9, 1, 0 }
  0x11   : > { %p3072_p11 = por %p83_p10, %p51_p3  ;;  %s103_s22 = sand.u32 1, %s2970_s8  }
  0x12   : > { %s2755_s23 = sshll.u32 %s103_s22, 4  ;;  %s2778_s24 = sshll.u32 %s2978_s10, 8 }
  0x13   : > { %s4123_s21 = scalar_select %p3072_p11, 1, 0 }
  0x14   : > { %s3083_s27 = scalar_lea.hbm %s4114_s0, %s2778_s24  ;;  %s107_s28 = scalar_lea.vmem [#allocation2], %s2755_s23 }
  0x15   : > { %s116_s29 = sshll.u32 %s107_s28, 4  ;;  %p3089_p0 = pnand %p2792_p13, %p3055_p4  ;;  %s3085_s29 = int_to_ptr.vmem [resolvable:$true] %s116_s29 }
  0x16   : > { %s3094_s2 = scalar_lea.sflag [#allocation3], %s103_s22  ;;  %s2870_s3 = scalar_lea.hbm %s3083_s27, 256 }
  0x17   : > { %p2871_p2 = scmp.ne.s32.totalorder %s3083_s27, %s2870_s3  ;;  %p2872_p3 = pneg %p3089_p0 }
  0x18   : > { %s2875_s12 = scalar_lea.hbm %s4114_s0, 512  ;;  %p2876_p4 = scmp.lt.u32.totalorder %s3083_s27, %s4114_s0 }
  0x19   : > { %p2873_p5 = pnand %p2872_p3, %p2871_p2  ;;  %p2877_p7 = scmp.lt.u32.totalorder %s2875_s12, %s2870_s3 }
  0x1a   : > { %p2879_p13 = scmp.lt.u32.totalorder %s2870_s3, %s3083_s27 }
  0x1b   : > { %p2874_p6 = pneg %p2873_p5  ;;  %p2878_p10 = por %p2877_p7, %p2876_p4 }
  0x1d   : > { %p2880_p12 = por %p2879_p13, %p2878_p10 }
  0x1f   : > { %p2881_p1 = pnand %p2880_p12, %p2874_p6 }
  0x21   : > { %2884 = shalt.err (!%p2881_p1)
}
  0x22   : > { %s2885_s16 = scalar_lea.vmem %s3085_s29, 256  ;;  %s2984_s17 = smov [#allocation2]  }
  0x23   : > { %p2886_p2 = scmp.ne.s32.totalorder %s3085_s29, %s2885_s16  ;;  %s2890_s22 = sshll.u32 %s2984_s17, 4  ;;  %s2891_s22 = int_to_ptr.vmem [resolvable:$false] %s2890_s22 }
  0x24   : > { %s2892_s23 = scalar_lea.vmem %s2891_s22, 512  ;;  %p2893_p9 = scmp.lt.s32.totalorder %s3085_s29, %s2891_s22 }
  0x25   : > { %p2888_p5 = pnand %p2886_p2, %p2872_p3  ;;  %p2894_p4 = scmp.lt.s32.totalorder %s2892_s23, %s2885_s16 }
  0x27   : > { %p2889_p11 = pneg %p2888_p5  ;;  %p2895_p7 = por %p2894_p4, %p2893_p9 }
  0x29   : > { %p2896_p10 = pnand %p2895_p7, %p2889_p11 }
  0x2b   : > { %2899 = shalt.err (!%p2896_p10)
}
  0x2c   : > { %s2985_s24 = smov 128   ;;  %s2986_s25 = smov 8  }
  0x2d   : > { %2787 = dma.hbm_to_vmem [thread:$0]  (!%p3089_p0), %s3083_s27, 256, %s3085_s29, %s3094_s2, %s2985_s24, %s2985_s24, %s2986_s25  }
  0x2e   : > { %p124_p12 = scmp.lt.s32.totalorder %s2982_s11, 3  ;;  %p4125_p1 = scmp.ge.s32.totalorder %s2982_s11, 1 }
  0x30   : > { %p125_p3 = pnand %p4125_p1, %p124_p12 }
  0x32   : > { %128 = sbr.rel (%p125_p3) target bundleno = 1264 (0x4f0), region = 24 }
  0x39   : > { %s3126_s26 = sand.u32 1, %s2966_s7  }
  0x3a   : > { %s2759_s28 = sshll.u32 %s3126_s26, 4  ;;  %s131_s3 = scalar_lea.sflag [#allocation3], %s3126_s26 }
  0x3b   : > { %s3130_s4 = scalar_lea.vmem [#allocation2], %s2759_s28 }
  0x3c   : > { %2953 = dma.done.wait (%p3061_p8), %s131_s3, 256  }
  0x3d   : > { %2955 = vsyncadd (%p3061_p8), %s131_s3, 4294967040  ;;  %v3137_v0 = vld [vmem:[%s3130_s4] sm:$0xff]  ;;  %s2987_s27 = smov 124   ;;  %s2988_s29 = smov 126   ;;  %v3144_v1 = vld [vmem:[%s3130_s4 + $0x8] sm:$0xff]  ;;  %v4117_v2 = vmov 0   ;;  %v206_v13 = vlaneseq }
  0x3e   : > { %165 = vrot.lane.b32.xlu1 %v3137_v0, %s2987_s27  ;;  %159 = vrot.lane.b32.xlu0 %v3137_v0, %s2988_s29  ;;  %s2989_s18 = smov 122   ;;  %s2990_s30 = smov 120   ;;  %v2996_v11 = vmov 1983009808   ;;  %v2997_v21 = vmov 1934713408  }
  0x3f   : > { %s2991_s2 = smov 118   ;;  %s2992_s5 = smov 116   ;;  %2861 = vset.pattern.permute.xlu1 %v4117_v2  ;;  %2860 = vset.pattern.permute.xlu0 %v4117_v2  ;;  %v204_v12 = vunpack.c.l.s4 %v2996_v11  ;;  %v3215_v17 = vshrl.u32 %v206_v13, 7  ;;  %v268_v22 = vunpack.c.l.s4 %v2997_v21  ;;  %vm603_vm0 = vcmask 1041409  }
  0x40   : > { %s2994_s12 = smov 114   ;;  %s2995_s13 = smov 112   ;;  %vm605_vm1 = vcmask 1042434   ;;  %vm607_vm2 = vcmask 1043459   ;;  %vm609_vm3 = vcmask 1044484   ;;  %vm611_vm4 = vcmask 1045509  }
  0x41   : > { %v205_v16 = vunpack.c.0.s8 %v204_v12  ;;  %v269_v30 = vunpack.c.0.s8 %v268_v22  ;;  %s2999_s15 = smov 96   ;;  %s2760_s16 = sshll.u32 %s3126_s26, 6  ;;  %vm613_vm5 = vcmask 1046534   ;;  %vm615_vm6 = vcmask 1047559  }
  0x42   : > { %167 = vrot.lane.b32.xlu1 %v3144_v1, %s2987_s27  ;;  %161 = vrot.lane.b32.xlu0 %v3144_v1, %s2988_s29  ;;  %vm626_vm7 = vcmask 64512   ;;  %s3385_s17 = scalar_lea.vmem [#allocation5], %s2760_s16  ;;  %vm1257_vm8 = vcmask 130112   ;;  %s3000_s22 = smov 80  }
  0x43   : > { %v3220_v23 = vsub.s32 %v205_v16, %v3215_v17  ;;  %v3231_v40 = vsub.s32 %v269_v30, %v3215_v17  ;;  %s2779_s23 = sshll.u32 %s2974_s9, 10  ;;  %s2664_s24 = sshll.u32 %s3385_s17, 4  ;;  %s4059_s24 = int_to_ptr.vmem [resolvable:$true] %s2664_s24 }
  0x44   : > { %s4057_s28 = scalar_lea.hbm %s4115_s1, %s2779_s23  ;;  %s2649_s3 = scalar_lea.sflag [#allocation4], %s3126_s26 }
  0x45   : > { %p4172_p9 = scmp.ne.s32.totalorder %s4122_s19, 0 }
  0x46   : > { %173 = vrot.lane.b32.xlu1 %v3144_v1, %s2989_s18  ;;  %171 = vrot.lane.b32.xlu0 %v3137_v0, %s2989_s18 }
  0x4a   : > { %179 = vrot.lane.b32.xlu1 %v3144_v1, %s2990_s30  ;;  %177 = vrot.lane.b32.xlu0 %v3137_v0, %s2990_s30 }
  0x4e   : > { %185 = vrot.lane.b32.xlu1 %v3144_v1, %s2991_s2  ;;  %183 = vrot.lane.b32.xlu0 %v3137_v0, %s2991_s2 }
  0x52   : > { %191 = vrot.lane.b32.xlu1 %v3144_v1, %s2992_s5  ;;  %189 = vrot.lane.b32.xlu0 %v3137_v0, %s2992_s5 }
  0x56   : > { %197 = vrot.lane.b32.xlu1 %v3144_v1, %s2994_s12  ;;  %195 = vrot.lane.b32.xlu0 %v3137_v0, %s2994_s12 }
  0x5a   : > { %766 = vrot.lane.b32.xlu1 %v3144_v1, %s2988_s29  ;;  %764 = vrot.lane.b32.xlu0 %v3137_v0, %s2988_s29 }
  0x5e   : > { %770 = vrot.lane.b32.xlu1 %v3144_v1, %s2987_s27  ;;  %768 = vrot.lane.b32.xlu0 %v3137_v0, %s2987_s27 }
  0x62   : > { %772 = vrot.lane.b32.xlu0 %v3137_v0, %s2989_s18  ;;  %774 = vrot.lane.b32.xlu1 %v3144_v1, %s2989_s18 }
  0x66   : > { %776 = vrot.lane.b32.xlu0 %v3137_v0, %s2990_s30  ;;  %778 = vrot.lane.b32.xlu1 %v3144_v1, %s2990_s30 }
  0x6a   : > { %780 = vrot.lane.b32.xlu0 %v3137_v0, %s2991_s2  ;;  %782 = vrot.lane.b32.xlu1 %v3144_v1, %s2991_s2 }
  0x6e   : > { %784 = vrot.lane.b32.xlu0 %v3137_v0, %s2992_s5  ;;  %786 = vrot.lane.b32.xlu1 %v3144_v1, %s2992_s5 }
  0x72   : > { %788 = vrot.lane.b32.xlu0 %v3137_v0, %s2994_s12  ;;  %790 = vrot.lane.b32.xlu1 %v3144_v1, %s2994_s12 }
  0x76   : > { %794 = vrot.lane.b32.xlu1 %v3144_v1, %s2995_s13  ;;  %792 = vrot.lane.b32.xlu0 %v3137_v0, %s2995_s13 }
  0xb0   : > { %v166_v3 = vpop.permute.xlu1 %165  ;;  %v160_v4 = vpop.permute.xlu0 %159 }
  0xb1   : > { %v201_v24 = vcombine.low %v3137_v0, %v166_v3  ;;  %v202_v41 = vcombine.high %v3137_v0, %v166_v3 }
  0xb3   : > { %v209_v31 = vrot.slane %v201_v24, %v3220_v23  ;;  %v216_v52 = vrot.slane %v202_v41, %v3220_v23 }
  0xb4   : > { %v3204_v5 = vpop.permute.xlu1 %167  ;;  %v3206_v6 = vpop.permute.xlu0 %161 }
  0xb5   : > { %v337_v62 = vcombine.low %v3144_v1, %v3204_v5 }
  0xb8   : > { %v3208_v7 = vpop.permute.xlu1 %173  ;;  %v172_v8 = vpop.permute.xlu0 %171 }
  0xb9   : > { %v217_v20 = vcombine.low %v160_v4, %v172_v8  ;;  %v218_v37 = vcombine.high %v160_v4, %v172_v8  ;;  %v353_v58 = vcombine.low %v3206_v6, %v3208_v7 }
  0xbb   : > { %v225_v28 = vrot.slane %v217_v20, %v3220_v23  ;;  %v232_v48 = vrot.slane %v218_v37, %v3220_v23  ;;  %v361_v11 = vrot.slane %v353_v58, %v3220_v23 }
  0xbc   : > { %v3210_v9 = vpop.permute.xlu1 %179  ;;  %v178_v10 = vpop.permute.xlu0 %177 }
  0xbd   : > { %v265_v38 = vcombine.low %v209_v31, %v225_v28  ;;  %v266_v49 = vcombine.high %v209_v31, %v225_v28  ;;  %v281_v59 = vcombine.low %v216_v52, %v232_v48  ;;  %v282_v12 = vcombine.high %v216_v52, %v232_v48 }
  0xbf   : > { %v273_v51 = vrot.slane %v265_v38, %v3231_v40  ;;  %v280_v61 = vrot.slane %v266_v49, %v3231_v40  ;;  %v289_v16 = vrot.slane %v281_v59, %v3231_v40  ;;  %v296_v30 = vrot.slane %v282_v12, %v3231_v40 }
  0xc0   : > { %v3212_v14 = vpop.permute.xlu1 %185  ;;  %v184_v15 = vpop.permute.xlu0 %183 }
  0xc4   : > { %v3217_v18 = vpop.permute.xlu1 %191  ;;  %v190_v19 = vpop.permute.xlu0 %189 }
  0xc5   : > { %v233_v25 = vcombine.low %v178_v10, %v190_v19  ;;  %v234_v39 = vcombine.high %v178_v10, %v190_v19  ;;  %v369_v60 = vcombine.low %v3210_v9, %v3217_v18  ;;  %v345_v19 = vrot.slane %v337_v62, %v3220_v23 }
  0xc7   : > { %v241_v34 = vrot.slane %v233_v25, %v3220_v23  ;;  %v248_v50 = vrot.slane %v234_v39, %v3220_v23  ;;  %v401_v28 = vcombine.low %v345_v19, %v361_v11 }
  0xc8   : > { %v3223_v26 = vpop.permute.xlu1 %197  ;;  %v196_v27 = vpop.permute.xlu0 %195 }
  0xc9   : > { %v249_v29 = vcombine.low %v184_v15, %v196_v27  ;;  %v250_v32 = vcombine.high %v184_v15, %v196_v27  ;;  %v385_v53 = vcombine.low %v3212_v14, %v3223_v26  ;;  %v377_v15 = vrot.slane %v369_v60, %v3220_v23 }
  0xca   : > { %v386_v20 = vcombine.high %v3212_v14, %v3223_v26  ;;  %v354_v27 = vcombine.high %v3206_v6, %v3208_v7  ;;  %v338_v14 = vcombine.high %v3144_v1, %v3204_v5 }
  0xcb   : > { %v257_v33 = vrot.slane %v249_v29, %v3220_v23  ;;  %v264_v43 = vrot.slane %v250_v32, %v3220_v23  ;;  %v393_v63 = vrot.slane %v385_v53, %v3220_v23  ;;  %v370_v29 = vcombine.high %v3210_v9, %v3217_v18 }
  0xcc   : > { %v767_v35 = vpop.permute.xlu1 %766  ;;  %v765_v36 = vpop.permute.xlu0 %764  ;;  %v400_v26 = vrot.slane %v386_v20, %v3220_v23  ;;  %v368_v7 = vrot.slane %v354_v27, %v3220_v23  ;;  %v409_v18 = vrot.slane %v401_v28, %v3231_v40  ;;  %v352_v5 = vrot.slane %v338_v14, %v3220_v23 }
  0xcd   : > { %798 = vrot.lane.b32.xlu1 %v767_v35, %s2995_s13  ;;  %v297_v42 = vcombine.low %v241_v34, %v257_v33  ;;  %796 = vrot.lane.b32.xlu0 %v765_v36, %s2995_s13  ;;  %v298_v44 = vcombine.high %v241_v34, %v257_v33  ;;  %v313_v54 = vcombine.low %v248_v50, %v264_v43 }
  0xce   : > { %v314_v3 = vcombine.high %v248_v50, %v264_v43  ;;  %v433_v21 = vcombine.low %v377_v15, %v393_v63  ;;  %v434_v31 = vcombine.high %v377_v15, %v393_v63  ;;  %v402_v34 = vcombine.high %v345_v19, %v361_v11 }
  0xcf   : > { %v305_v47 = vrot.slane %v297_v42, %v3231_v40  ;;  %v312_v56 = vrot.slane %v298_v44, %v3231_v40  ;;  %v321_v8 = vrot.slane %v313_v54, %v3231_v40  ;;  %v384_v9 = vrot.slane %v370_v29, %v3220_v23 }
  0xd0   : > { %v771_v45 = vpop.permute.xlu1 %770  ;;  %v769_v46 = vpop.permute.xlu0 %768  ;;  %v328_v24 = vrot.slane %v314_v3, %v3231_v40  ;;  %v441_v33 = vrot.slane %v433_v21, %v3231_v40  ;;  %v448_v37 = vrot.slane %v434_v31, %v3231_v40  ;;  %v417_v39 = vcombine.low %v352_v5, %v368_v7 }
  0xd1   : > { %802 = vrot.lane.b32.xlu1 %v771_v45, %s2995_s13  ;;  %800 = vrot.lane.b32.xlu0 %v769_v46, %s2995_s13  ;;  %v3245_v55 = vcombine.high %v273_v51, %v305_v47  ;;  %v3258_v4 = vcombine.low %v280_v61, %v312_v56  ;;  %v329_v10 = vcombine.low %v273_v51, %v305_v47 }
  0xd2   : > { %v3268_v22 = vcombine.low %v289_v16, %v321_v8  ;;  %v332_v25 = vcombine.high %v280_v61, %v312_v56  ;;  %v3280_v32 = vcombine.low %v296_v30, %v328_v24  ;;  %v334_v6 = vcombine.high %v289_v16, %v321_v8 }
  0xd3   : > { %v449_v35 = vcombine.low %v384_v9, %v400_v26  ;;  %v3288_v36 = vcombine.low %v409_v18, %v441_v33  ;;  %v336_v38 = vcombine.high %v296_v30, %v328_v24  ;;  %v416_v41 = vrot.slane %v402_v34, %v3231_v40 }
  0xd4   : > { %v773_v57 = vpop.permute.xlu0 %772  ;;  %v450_v42 = vcombine.high %v384_v9, %v400_v26  ;;  %v466_v45 = vcombine.high %v409_v18, %v441_v33  ;;  %v418_v46 = vcombine.high %v352_v5, %v368_v7  ;;  %v425_v47 = vrot.slane %v417_v39, %v3231_v40  ;;  %v775_v61 = vpop.permute.xlu1 %774 }
  0xd5   : > { %493 = vperm.xlu1 %2861, %v3245_v55   ;;  %804 = vrot.lane.b32.xlu0 %v773_v57, %s2995_s13  ;;  %v3293_v43 = vcombine.low %v416_v41, %v448_v37  ;;  %v457_v44 = vrot.slane %v449_v35, %v3231_v40  ;;  %v468_v50 = vcombine.high %v416_v41, %v448_v37  ;;  %v4118_v57 = vmov 1  }
  0xd6   : > { %v464_v49 = vrot.slane %v450_v42, %v3231_v40  ;;  %v432_v51 = vrot.slane %v418_v46, %v3231_v40  ;;  %v3361_v16 = vand.u32 127, %v206_v13 }
  0xd7   : > { %v3298_v48 = vcombine.low %v425_v47, %v457_v44  ;;  %v470_v53 = vcombine.high %v425_v47, %v457_v44 }
  0xd8   : > { %v3303_v52 = vcombine.low %v432_v51, %v464_v49  ;;  %v777_v54 = vpop.permute.xlu0 %776  ;;  %v472_v56 = vcombine.high %v432_v51, %v464_v49  ;;  %v779_v62 = vpop.permute.xlu1 %778  ;;  %v3367_v21 = vsub.s32 %v3361_v16, %v3215_v17 }
  0xd9   : > { %496 = vperm.xlu1 %2861, %v3258_v4   ;;  %490 = vperm.xlu0 %2860, %v329_v10  }
  0xdc   : > { %v781_v58 = vpop.permute.xlu0 %780  ;;  %v783_v63 = vpop.permute.xlu1 %782 }
  0xdd   : > { %502 = vperm.xlu1 %2861, %v3268_v22   ;;  %499 = vperm.xlu0 %2860, %v332_v25  }
  0xe0   : > { %v785_v59 = vpop.permute.xlu0 %784  ;;  %v787_v3 = vpop.permute.xlu1 %786 }
  0xe1   : > { %508 = vperm.xlu1 %2861, %v3280_v32   ;;  %505 = vperm.xlu0 %2860, %v334_v6  }
  0xe4   : > { %v789_v60 = vpop.permute.xlu0 %788 }
  0xe5   : > { %514 = vperm.xlu1 %2861, %v3288_v36   ;;  %511 = vperm.xlu0 %2860, %v336_v38  }
  0xe9   : > { %520 = vperm.xlu1 %2861, %v3293_v43   ;;  %517 = vperm.xlu0 %2860, %v466_v45  }
  0xed   : > { %526 = vperm.xlu1 %2861, %v3298_v48   ;;  %523 = vperm.xlu0 %2860, %v468_v50  }
  0xf1   : > { %532 = vperm.xlu1 %2861, %v3303_v52   ;;  %529 = vperm.xlu0 %2860, %v470_v53  }
  0xf5   : > { %2862 = vset.pattern.permute.xlu1 %v4118_v57  ;;  %535 = vperm.xlu0 %2860, %v472_v56  }
  0xf6   : > { %630 = vperm.xlu1 %2862, %v329_v10  }
  0xf9   : > { %808 = vrot.lane.b32.xlu0 %v777_v54, %s2995_s13 }
  0xfa   : > { %636 = vperm.xlu1 %2862, %v3258_v4   ;;  %v791_v4 = vpop.permute.xlu1 %790 }
  0xfd   : > { %812 = vrot.lane.b32.xlu0 %v781_v58, %s2995_s13 }
  0xfe   : > { %639 = vperm.xlu1 %2862, %v332_v25   ;;  %v3348_v8 = vpop.permute.xlu1 %794 }
 0x101   : > { %816 = vrot.lane.b32.xlu0 %v785_v59, %s2995_s13 }
 0x102   : > { %645 = vperm.xlu1 %2862, %v334_v6  }
 0x105   : > { %820 = vrot.lane.b32.xlu0 %v789_v60, %s2995_s13 }
 0x106   : > { %651 = vperm.xlu1 %2862, %v336_v38  }
 0x109   : > { %1394 = vrot.lane.b32.xlu0 %v3137_v0, %s2988_s29 }
 0x10a   : > { %657 = vperm.xlu1 %2862, %v466_v45  }
 0x10d   : > { %1398 = vrot.lane.b32.xlu0 %v3137_v0, %s2987_s27 }
 0x10e   : > { %663 = vperm.xlu1 %2862, %v468_v50  }
 0x111   : > { %1402 = vrot.lane.b32.xlu0 %v3137_v0, %s2989_s18 }
 0x112   : > { %669 = vperm.xlu1 %2862, %v470_v53  }
 0x115   : > { %1406 = vrot.lane.b32.xlu0 %v3137_v0, %s2990_s30 }
 0x116   : > { %675 = vperm.xlu1 %2862, %v472_v56  }
 0x119   : > { %1410 = vrot.lane.b32.xlu0 %v3137_v0, %s2991_s2 }
 0x11a   : > { %806 = vrot.lane.b32.xlu1 %v775_v61, %s2995_s13 }
 0x11b   : > { %2863 = vset.pattern.permute.xlu1 %v4117_v2 }
 0x11d   : > { %1414 = vrot.lane.b32.xlu0 %v3137_v0, %s2992_s5 }
 0x11e   : > { %810 = vrot.lane.b32.xlu1 %v779_v62, %s2995_s13 }
 0x121   : > { %1418 = vrot.lane.b32.xlu0 %v3137_v0, %s2994_s12 }
 0x122   : > { %814 = vrot.lane.b32.xlu1 %v783_v63, %s2995_s13 }
 0x125   : > { %1422 = vrot.lane.b32.xlu0 %v3137_v0, %s2999_s15  ;;  %v3346_v0 = vpop.permute.xlu0 %792 }
 0x126   : > { %818 = vrot.lane.b32.xlu1 %v787_v3, %s2995_s13 }
 0x12a   : > { %822 = vrot.lane.b32.xlu1 %v791_v4, %s2995_s13 }
 0x12e   : > { %1396 = vrot.lane.b32.xlu1 %v3144_v1, %s2988_s29 }
 0x132   : > { %1400 = vrot.lane.b32.xlu1 %v3144_v1, %s2987_s27 }
 0x136   : > { %1404 = vrot.lane.b32.xlu1 %v3144_v1, %s2989_s18 }
 0x13a   : > { %1408 = vrot.lane.b32.xlu1 %v3144_v1, %s2990_s30 }
 0x13e   : > { %1412 = vrot.lane.b32.xlu1 %v3144_v1, %s2991_s2 }
 0x13f   : > { %v3352_v10 = vpop.permute.xlu0 %796  ;;  %v3354_v11 = vpop.permute.xlu1 %798 }
 0x142   : > { %1416 = vrot.lane.b32.xlu1 %v3144_v1, %s2992_s5 }
 0x143   : > { %v3356_v12 = vpop.permute.xlu0 %800  ;;  %v3358_v15 = vpop.permute.xlu1 %802 }
 0x146   : > { %1420 = vrot.lane.b32.xlu1 %v3144_v1, %s2994_s12 }
 0x147   : > { %v3363_v20 = vpop.permute.xlu0 %804 }
 0x154   : > { %v494_v19 = vpop.permute.xlu1 %493 }
 0x155   : > { %v546_v27 = vrot.slane %v494_v19, %v3367_v21 }
 0x158   : > { %v497_v24 = vpop.permute.xlu1 %496  ;;  %v491_v25 = vpop.permute.xlu0 %490 }
 0x159   : > { %v542_v28 = vrot.slane %v491_v25, %v3367_v21  ;;  %v550_v29 = vrot.slane %v497_v24, %v3367_v21 }
 0x15b   : > { %v604_v30 = vsel %vm603_vm0, %v546_v27, %v542_v28 }
 0x15c   : > { %v503_v13 = vpop.permute.xlu1 %502  ;;  %v500_v14 = vpop.permute.xlu0 %499  ;;  %v606_v33 = vsel %vm605_vm1, %v550_v29, %v604_v30 }
 0x15d   : > { %v554_v26 = vrot.slane %v500_v14, %v3367_v21  ;;  %v558_v31 = vrot.slane %v503_v13, %v3367_v21 }
 0x15f   : > { %v608_v6 = vsel %vm607_vm2, %v554_v26, %v606_v33  ;;  %v840_v26 = vcombine.low %v3346_v0, %v3356_v12 }
 0x160   : > { %v509_v7 = vpop.permute.xlu1 %508  ;;  %v506_v34 = vpop.permute.xlu0 %505  ;;  %v610_v5 = vsel %vm609_vm3, %v558_v31, %v608_v6  ;;  %v856_v31 = vcombine.low %v3352_v10, %v3363_v20 }
 0x161   : > { %v562_v9 = vrot.slane %v506_v34, %v3367_v21  ;;  %v566_v18 = vrot.slane %v509_v7, %v3367_v21  ;;  %v848_v34 = vrot.slane %v840_v26, %v3220_v23 }
 0x163   : > { %v612_v35 = vsel %vm611_vm4, %v562_v9, %v610_v5  ;;  %v864_v9 = vrot.slane %v856_v31, %v3220_v23 }
 0x164   : > { %v515_v37 = vpop.permute.xlu1 %514  ;;  %v512_v38 = vpop.permute.xlu0 %511  ;;  %v614_v41 = vsel %vm613_vm5, %v566_v18, %v612_v35 }
 0x165   : > { %v570_v39 = vrot.slane %v512_v38, %v3367_v21  ;;  %v574_v46 = vrot.slane %v515_v37, %v3367_v21 }
 0x167   : > { %v616_v42 = vsel %vm615_vm6, %v570_v39, %v614_v41  ;;  %v841_v41 = vcombine.high %v3346_v0, %v3356_v12 }
 0x168   : > { %v521_v44 = vpop.permute.xlu1 %520  ;;  %627 = vst.msk [vmem:[%s3385_s17] sm:$0xff] %vm626_vm7, %v616_v42  ;;  %v518_v45 = vpop.permute.xlu0 %517  ;;  %v857_v42 = vcombine.high %v3352_v10, %v3363_v20 }
 0x169   : > { %v578_v47 = vrot.slane %v518_v45, %v3367_v21  ;;  %v582_v49 = vrot.slane %v521_v44, %v3367_v21  ;;  %v904_v44 = vcombine.low %v848_v34, %v864_v9 }
 0x16b   : > { %v617_v50 = vsel %vm603_vm0, %v578_v47, %v574_v46  ;;  %v912_v0 = vrot.slane %v904_v44, %v3231_v40 }
 0x16c   : > { %v527_v51 = vpop.permute.xlu1 %526  ;;  %v524_v53 = vpop.permute.xlu0 %523  ;;  %v618_v58 = vsel %vm605_vm1, %v582_v49, %v617_v50 }
 0x16d   : > { %v586_v54 = vrot.slane %v524_v53, %v3367_v21  ;;  %v590_v56 = vrot.slane %v527_v51, %v3367_v21  ;;  %v855_v53 = vrot.slane %v841_v41, %v3220_v23 }
 0x16f   : > { %v619_v59 = vsel %vm607_vm2, %v586_v54, %v618_v58  ;;  %v871_v54 = vrot.slane %v857_v42, %v3220_v23 }
 0x170   : > { %v533_v60 = vpop.permute.xlu1 %532  ;;  %v530_v61 = vpop.permute.xlu0 %529  ;;  %v620_v3 = vsel %vm609_vm3, %v590_v56, %v619_v59  ;;  %v905_v56 = vcombine.high %v848_v34, %v864_v9 }
 0x171   : > { %v594_v62 = vrot.slane %v530_v61, %v3367_v21  ;;  %v598_v63 = vrot.slane %v533_v60, %v3367_v21  ;;  %v920_v61 = vcombine.low %v855_v53, %v871_v54 }
 0x173   : > { %v621_v4 = vsel %vm611_vm4, %v594_v62, %v620_v3  ;;  %v919_v62 = vrot.slane %v905_v56, %v3231_v40 }
 0x174   : > { %v536_v19 = vpop.permute.xlu0 %535  ;;  %v622_v27 = vsel %vm613_vm5, %v598_v63, %v621_v4 }
 0x175   : > { %v3401_v24 = vpop.permute.xlu1 %630  ;;  %v602_v25 = vrot.slane %v536_v19, %v3367_v21 }
 0x177   : > { %v623_v28 = vsel %vm615_vm6, %v602_v25, %v622_v27  ;;  %v921_v27 = vcombine.high %v855_v53, %v871_v54 }
 0x178   : > { %628 = vst.msk [vmem:[%s3385_s17 + $0x8] sm:$0xff] %vm626_vm7, %v623_v28  ;;  %v809_v29 = vpop.permute.xlu0 %808  ;;  %v928_v28 = vrot.slane %v920_v61, %v3231_v40 }
 0x179   : > { %v3408_v30 = vpop.permute.xlu1 %636 }
 0x17c   : > { %v813_v13 = vpop.permute.xlu0 %812 }
 0x17d   : > { %v3410_v14 = vpop.permute.xlu1 %639 }
 0x180   : > { %v817_v33 = vpop.permute.xlu0 %816 }
 0x181   : > { %v3416_v6 = vpop.permute.xlu1 %645  ;;  %v872_v7 = vcombine.low %v809_v29, %v817_v33  ;;  %v873_v35 = vcombine.high %v809_v29, %v817_v33  ;;  %v935_v33 = vrot.slane %v921_v27, %v3231_v40 }
 0x183   : > { %v880_v37 = vrot.slane %v872_v7, %v3220_v23  ;;  %v887_v47 = vrot.slane %v873_v35, %v3220_v23 }
 0x184   : > { %v821_v18 = vpop.permute.xlu0 %820 }
 0x185   : > { %v3420_v5 = vpop.permute.xlu1 %651  ;;  %v888_v38 = vcombine.low %v813_v13, %v821_v18  ;;  %v889_v39 = vcombine.high %v813_v13, %v821_v18 }
 0x187   : > { %v896_v45 = vrot.slane %v888_v38, %v3220_v23  ;;  %v903_v49 = vrot.slane %v889_v39, %v3220_v23  ;;  %v976_v39 = vcombine.low %v3348_v8, %v3358_v15 }
 0x189   : > { %v3428_v46 = vpop.permute.xlu1 %657  ;;  %v936_v50 = vcombine.low %v880_v37, %v896_v45  ;;  %v937_v51 = vcombine.high %v880_v37, %v896_v45  ;;  %v952_v20 = vcombine.low %v887_v47, %v903_v49  ;;  %v953_v3 = vcombine.high %v887_v47, %v903_v49 }
 0x18a   : > { %4126 = vst [vmem:[#allocation8_spill] sm:$0xff] %v3428_v46  ;;  %v984_v45 = vrot.slane %v976_v39, %v3220_v23 }
 0x18b   : > { %v944_v10 = vrot.slane %v936_v50, %v3231_v40  ;;  %v951_v60 = vrot.slane %v937_v51, %v3231_v40  ;;  %v960_v25 = vrot.slane %v952_v20, %v3231_v40  ;;  %v967_v31 = vrot.slane %v953_v3, %v3231_v40 }
 0x18d   : > { %v3436_v12 = vpop.permute.xlu1 %663  ;;  %v3438_v58 = vcombine.high %v912_v0, %v944_v10  ;;  %v3440_v59 = vcombine.low %v912_v0, %v944_v10  ;;  %v3448_v4 = vcombine.low %v919_v62, %v951_v60  ;;  %v3450_v19 = vcombine.high %v919_v62, %v951_v60 }
 0x18e   : > { %4127 = vst [vmem:[#allocation9_spill] sm:$0xff] %v3436_v12  ;;  %v3458_v13 = vcombine.low %v928_v28, %v960_v25  ;;  %v3460_v26 = vcombine.high %v928_v28, %v960_v25  ;;  %v3466_v34 = vcombine.low %v935_v33, %v967_v31  ;;  %v3468_v9 = vcombine.high %v935_v33, %v967_v31 }
 0x18f   : > { %1132 = vperm.xlu1 %2863, %v3438_v58   ;;  %1129 = vperm.xlu0 %2860, %v3440_v59   ;;  %v977_v0 = vcombine.high %v3348_v8, %v3358_v15 }
 0x191   : > { %v3446_v63 = vpop.permute.xlu1 %669  ;;  %v991_v27 = vrot.slane %v977_v0, %v3220_v23 }
 0x192   : > { %4128 = vst [vmem:[#allocation10_spill] sm:$0xff] %v3446_v63 }
 0x193   : > { %1135 = vperm.xlu1 %2863, %v3448_v4   ;;  %1138 = vperm.xlu0 %2860, %v3450_v19  }
 0x195   : > { %v3456_v29 = vpop.permute.xlu1 %675 }
 0x196   : > { %4129 = vst [vmem:[#allocation11_spill] sm:$0xff] %v3456_v29 }
 0x197   : > { %1141 = vperm.xlu1 %2863, %v3458_v13   ;;  %1144 = vperm.xlu0 %2860, %v3460_v26  }
 0x199   : > { %v807_v7 = vpop.permute.xlu1 %806 }
 0x19a   : > { %v992_v37 = vcombine.low %v3354_v11, %v807_v7  ;;  %v993_v50 = vcombine.high %v3354_v11, %v807_v7 }
 0x19b   : > { %1147 = vperm.xlu1 %2863, %v3466_v34   ;;  %1150 = vperm.xlu0 %2860, %v3468_v9  }
 0x19c   : > { %v1000_v41 = vrot.slane %v992_v37, %v3220_v23  ;;  %v1007_v61 = vrot.slane %v993_v50, %v3220_v23 }
 0x19d   : > { %v811_v18 = vpop.permute.xlu1 %810 }
 0x19e   : > { %v1040_v51 = vcombine.low %v984_v45, %v1000_v41  ;;  %v1041_v62 = vcombine.high %v984_v45, %v1000_v41  ;;  %v1056_v15 = vcombine.low %v991_v27, %v1007_v61  ;;  %v1057_v41 = vcombine.high %v991_v27, %v1007_v61 }
 0x1a0   : > { %v1048_v11 = vrot.slane %v1040_v51, %v3231_v40  ;;  %v1055_v7 = vrot.slane %v1041_v62, %v3231_v40  ;;  %v1071_v50 = vrot.slane %v1057_v41, %v3231_v40 }
 0x1a1   : > { %v815_v35 = vpop.permute.xlu1 %814 }
 0x1a5   : > { %v819_v38 = vpop.permute.xlu1 %818 }
 0x1a6   : > { %v1008_v42 = vcombine.low %v811_v18, %v819_v38  ;;  %v1009_v53 = vcombine.high %v811_v18, %v819_v38  ;;  %v1395_v18 = vpop.permute.xlu0 %1394 }
 0x1a8   : > { %v1016_v54 = vrot.slane %v1008_v42, %v3220_v23  ;;  %v1023_v3 = vrot.slane %v1009_v53, %v3220_v23  ;;  %v1064_v42 = vrot.slane %v1056_v15, %v3231_v40 }
 0x1a9   : > { %v823_v44 = vpop.permute.xlu1 %822 }
 0x1aa   : > { %v1024_v47 = vcombine.low %v815_v35, %v823_v44  ;;  %v1025_v49 = vcombine.high %v815_v35, %v823_v44 }
 0x1ac   : > { %v1032_v56 = vrot.slane %v1024_v47, %v3220_v23  ;;  %v1039_v10 = vrot.slane %v1025_v49, %v3220_v23  ;;  %v1399_v49 = vpop.permute.xlu0 %1398 }
 0x1ae   : > { %v1072_v20 = vcombine.low %v1016_v54, %v1032_v56  ;;  %v1073_v60 = vcombine.high %v1016_v54, %v1032_v56  ;;  %v1088_v28 = vcombine.low %v1023_v3, %v1039_v10  ;;  %v1089_v35 = vcombine.high %v1023_v3, %v1039_v10 }
 0x1b0   : > { %v1080_v25 = vrot.slane %v1072_v20, %v3231_v40  ;;  %v1087_v8 = vrot.slane %v1073_v60, %v3231_v40  ;;  %v1096_v39 = vrot.slane %v1088_v28, %v3231_v40  ;;  %v1103_v47 = vrot.slane %v1089_v35, %v3231_v40  ;;  %v1403_v54 = vpop.permute.xlu0 %1402 }
 0x1b2   : > { %v3488_v31 = vcombine.low %v1048_v11, %v1080_v25  ;;  %v1105_v33 = vcombine.high %v1048_v11, %v1080_v25  ;;  %v3493_v37 = vcombine.low %v1055_v7, %v1087_v8  ;;  %v1107_v38 = vcombine.high %v1055_v7, %v1087_v8 }
 0x1b3   : > { %v3498_v44 = vcombine.low %v1064_v42, %v1096_v39  ;;  %v1109_v45 = vcombine.high %v1064_v42, %v1096_v39  ;;  %v3503_v51 = vcombine.low %v1071_v50, %v1103_v47  ;;  %v1111_v53 = vcombine.high %v1071_v50, %v1103_v47 }
 0x1b4   : > { %1153 = vperm.xlu1 %2863, %v3488_v31   ;;  %1156 = vperm.xlu0 %2860, %v1105_v33   ;;  %v1407_v56 = vpop.permute.xlu0 %1406 }
 0x1b8   : > { %1159 = vperm.xlu1 %2863, %v3493_v37   ;;  %1162 = vperm.xlu0 %2860, %v1107_v38   ;;  %v1411_v0 = vpop.permute.xlu0 %1410 }
 0x1bc   : > { %1165 = vperm.xlu1 %2863, %v3498_v44   ;;  %1168 = vperm.xlu0 %2860, %v1109_v45   ;;  %v1415_v10 = vpop.permute.xlu0 %1414 }
 0x1c0   : > { %1171 = vperm.xlu1 %2863, %v3503_v51   ;;  %1174 = vperm.xlu0 %2860, %v1111_v53  }
 0x1c4   : > { %2864 = vset.pattern.permute.xlu1 %v4118_v57  ;;  %1426 = vrot.lane.b32.xlu0 %v1395_v18, %s2999_s15 }
 0x1c5   : > { %1261 = vperm.xlu1 %2864, %v3440_v59   ;;  %v1419_v59 = vpop.permute.xlu0 %1418 }
 0x1c8   : > { %1430 = vrot.lane.b32.xlu0 %v1399_v49, %s2999_s15 }
 0x1c9   : > { %1267 = vperm.xlu1 %2864, %v3448_v4   ;;  %v1397_v4 = vpop.permute.xlu1 %1396  ;;  %v3530_v62 = vpop.permute.xlu0 %1422 }
 0x1cc   : > { %1434 = vrot.lane.b32.xlu0 %v1403_v54, %s2999_s15 }
 0x1cd   : > { %1270 = vperm.xlu1 %2864, %v3450_v19   ;;  %v1401_v19 = vpop.permute.xlu1 %1400 }
 0x1d0   : > { %1438 = vrot.lane.b32.xlu0 %v1407_v56, %s2999_s15 }
 0x1d1   : > { %1276 = vperm.xlu1 %2864, %v3460_v26   ;;  %v1405_v26 = vpop.permute.xlu1 %1404 }
 0x1d4   : > { %1442 = vrot.lane.b32.xlu0 %v1411_v0, %s2999_s15 }
 0x1d5   : > { %1282 = vperm.xlu1 %2864, %v3468_v9   ;;  %v1409_v9 = vpop.permute.xlu1 %1408 }
 0x1d8   : > { %1446 = vrot.lane.b32.xlu0 %v1415_v10, %s2999_s15 }
 0x1d9   : > { %1288 = vperm.xlu1 %2864, %v1105_v33   ;;  %v1413_v20 = vpop.permute.xlu1 %1412 }
 0x1dc   : > { %1450 = vrot.lane.b32.xlu0 %v1419_v59, %s2999_s15 }
 0x1dd   : > { %1294 = vperm.xlu1 %2864, %v1107_v38   ;;  %v1417_v60 = vpop.permute.xlu1 %1416 }
 0x1e1   : > { %1300 = vperm.xlu1 %2864, %v1109_v45   ;;  %v1421_v61 = vpop.permute.xlu1 %1420 }
 0x1e5   : > { %1306 = vperm.xlu1 %2864, %v1111_v53  }
 0x1e9   : > { %1424 = vrot.lane.b32.xlu1 %v3144_v1, %s2999_s15  ;;  %v1176_v1 = vadd.s32 4294967288, %v3361_v16 }
 0x1ea   : > { %2865 = vset.pattern.permute.xlu1 %v4117_v2 }
 0x1eb   : > { %v3533_v3 = vsub.s32 %v1176_v1, %v3215_v17 }
 0x1ed   : > { %1428 = vrot.lane.b32.xlu1 %v1397_v4, %s2999_s15 }
 0x1f1   : > { %1432 = vrot.lane.b32.xlu1 %v1401_v19, %s2999_s15 }
 0x1f5   : > { %1436 = vrot.lane.b32.xlu1 %v1405_v26, %s2999_s15 }
 0x1f9   : > { %1440 = vrot.lane.b32.xlu1 %v1409_v9, %s2999_s15 }
 0x1fd   : > { %1444 = vrot.lane.b32.xlu1 %v1413_v20, %s2999_s15 }
 0x201   : > { %1448 = vrot.lane.b32.xlu1 %v1417_v60, %s2999_s15 }
 0x205   : > { %1452 = vrot.lane.b32.xlu1 %v1421_v61, %s2999_s15 }
 0x20e   : > { %v1133_v11 = vpop.permute.xlu1 %1132  ;;  %v1130_v25 = vpop.permute.xlu0 %1129 }
 0x20f   : > { %v1184_v27 = vrot.slane %v1133_v11, %v3533_v3  ;;  %v1180_v28 = vrot.slane %v1130_v25, %v3533_v3 }
 0x211   : > { %v1241_v7 = vsel %vm603_vm0, %v1184_v27, %v1180_v28 }
 0x212   : > { %v1136_v33 = vpop.permute.xlu1 %1135  ;;  %v1139_v8 = vpop.permute.xlu0 %1138 }
 0x213   : > { %v1188_v15 = vrot.slane %v1136_v33, %v3533_v3  ;;  %v1192_v18 = vrot.slane %v1139_v8, %v3533_v3 }
 0x215   : > { %v1242_v16 = vsel %vm605_vm1, %v1188_v15, %v1241_v7 }
 0x216   : > { %v1142_v35 = vpop.permute.xlu1 %1141  ;;  %v1145_v17 = vpop.permute.xlu0 %1144  ;;  %v1243_v39 = vsel %vm607_vm2, %v1192_v18, %v1242_v16 }
 0x217   : > { %v1196_v38 = vrot.slane %v1142_v35, %v3533_v3  ;;  %v1200_v41 = vrot.slane %v1145_v17, %v3533_v3 }
 0x219   : > { %v1244_v42 = vsel %vm609_vm3, %v1196_v38, %v1243_v39 }
 0x21a   : > { %v1148_v45 = vpop.permute.xlu1 %1147  ;;  %v1151_v47 = vpop.permute.xlu0 %1150  ;;  %v1245_v53 = vsel %vm611_vm4, %v1200_v41, %v1244_v42 }
 0x21b   : > { %v1204_v49 = vrot.slane %v1148_v45, %v3533_v3  ;;  %v1208_v50 = vrot.slane %v1151_v47, %v3533_v3 }
 0x21d   : > { %v1246_v54 = vsel %vm613_vm5, %v1204_v49, %v1245_v53 }
 0x21e   : > { %v1247_v56 = vsel %vm615_vm6, %v1208_v50, %v1246_v54 }
 0x21f   : > { %1258 = vst.msk [vmem:[%s3385_s17] sm:$0xff] %vm1257_vm8, %v1247_v56 }
 0x233   : > { %v1154_v0 = vpop.permute.xlu1 %1153  ;;  %v1157_v10 = vpop.permute.xlu0 %1156 }
 0x234   : > { %v1212_v59 = vrot.slane %v1154_v0, %v3533_v3  ;;  %v1216_v4 = vrot.slane %v1157_v10, %v3533_v3 }
 0x236   : > { %v1248_v20 = vsel %vm603_vm0, %v1216_v4, %v1212_v59 }
 0x237   : > { %v1160_v19 = vpop.permute.xlu1 %1159  ;;  %v1163_v26 = vpop.permute.xlu0 %1162 }
 0x238   : > { %v1220_v9 = vrot.slane %v1160_v19, %v3533_v3  ;;  %v1224_v60 = vrot.slane %v1163_v26, %v3533_v3 }
 0x23a   : > { %v1249_v61 = vsel %vm605_vm1, %v1220_v9, %v1248_v20 }
 0x23b   : > { %v1166_v1 = vpop.permute.xlu1 %1165  ;;  %v1169_v11 = vpop.permute.xlu0 %1168  ;;  %v1250_v27 = vsel %vm607_vm2, %v1224_v60, %v1249_v61 }
 0x23c   : > { %v1228_v25 = vrot.slane %v1166_v1, %v3533_v3  ;;  %v1232_v28 = vrot.slane %v1169_v11, %v3533_v3 }
 0x23e   : > { %v1251_v33 = vsel %vm609_vm3, %v1228_v25, %v1250_v27 }
 0x23f   : > { %v1172_v8 = vpop.permute.xlu1 %1171  ;;  %v1175_v15 = vpop.permute.xlu0 %1174  ;;  %v1252_v16 = vsel %vm611_vm4, %v1232_v28, %v1251_v33 }
 0x240   : > { %v1236_v7 = vrot.slane %v1172_v8, %v3533_v3  ;;  %v1240_v18 = vrot.slane %v1175_v15, %v3533_v3 }
 0x242   : > { %v1253_v35 = vsel %vm613_vm5, %v1236_v7, %v1252_v16 }
 0x243   : > { %v1254_v17 = vsel %vm615_vm6, %v1240_v18, %v1253_v35  ;;  %v1427_v38 = vpop.permute.xlu0 %1426 }
 0x244   : > { %1259 = vst.msk [vmem:[%s3385_s17 + $0x8] sm:$0xff] %vm1257_vm8, %v1254_v17  ;;  %v3569_v39 = vpop.permute.xlu1 %1261 }
 0x245   : > { %4130 = vst [vmem:[#allocation12_spill] sm:$0xff] %v3569_v39 }
 0x247   : > { %v1431_v41 = vpop.permute.xlu0 %1430 }
 0x248   : > { %v3571_v42 = vpop.permute.xlu1 %1267  ;;  %v1470_v0 = vcombine.low %v3530_v62, %v1431_v41  ;;  %v1471_v33 = vcombine.high %v3530_v62, %v1431_v41 }
 0x249   : > { %4131 = vst [vmem:[#allocation13_spill] sm:$0xff] %v3571_v42 }
 0x24a   : > { %v1478_v26 = vrot.slane %v1470_v0, %v3220_v23 }
 0x24b   : > { %v1435_v45 = vpop.permute.xlu0 %1434 }
 0x24c   : > { %v3573_v47 = vpop.permute.xlu1 %1270  ;;  %v1486_v56 = vcombine.low %v1427_v38, %v1435_v45  ;;  %v1487_v25 = vcombine.high %v1427_v38, %v1435_v45  ;;  %v1485_v45 = vrot.slane %v1471_v33, %v3220_v23 }
 0x24d   : > { %4132 = vst [vmem:[#allocation14_spill] sm:$0xff] %v3573_v47 }
 0x24e   : > { %v1494_v19 = vrot.slane %v1486_v56, %v3220_v23  ;;  %v1501_v35 = vrot.slane %v1487_v25, %v3220_v23 }
 0x24f   : > { %v1439_v49 = vpop.permute.xlu0 %1438 }
 0x250   : > { %v3575_v50 = vpop.permute.xlu1 %1276  ;;  %v1534_v27 = vcombine.low %v1478_v26, %v1494_v19  ;;  %v1535_v17 = vcombine.high %v1478_v26, %v1494_v19 }
 0x251   : > { %4133 = vst [vmem:[#allocation15_spill] sm:$0xff] %v3575_v50 }
 0x253   : > { %v1443_v53 = vpop.permute.xlu0 %1442 }
 0x254   : > { %v3577_v54 = vpop.permute.xlu1 %1282 }
 0x255   : > { %4134 = vst [vmem:[#allocation16_spill] sm:$0xff] %v3577_v54 }
 0x257   : > { %v1447_v10 = vpop.permute.xlu0 %1446 }
 0x258   : > { %v1502_v59 = vcombine.low %v1439_v49, %v1447_v10  ;;  %v3580_v4 = vpop.permute.xlu1 %1288  ;;  %v1503_v20 = vcombine.high %v1439_v49, %v1447_v10  ;;  %v1542_v49 = vrot.slane %v1534_v27, %v3231_v40  ;;  %v1550_v10 = vcombine.low %v1485_v45, %v1501_v35 }
 0x259   : > { %4135 = vst [vmem:[#allocation17_spill] sm:$0xff] %v3580_v4 }
 0x25a   : > { %v1510_v60 = vrot.slane %v1502_v59, %v3220_v23  ;;  %v1517_v8 = vrot.slane %v1503_v20, %v3220_v23  ;;  %v1549_v59 = vrot.slane %v1535_v17, %v3231_v40 }
 0x25b   : > { %v1451_v9 = vpop.permute.xlu0 %1450 }
 0x25c   : > { %v1518_v61 = vcombine.low %v1443_v53, %v1451_v9  ;;  %v1519_v1 = vcombine.high %v1443_v53, %v1451_v9  ;;  %v3585_v11 = vpop.permute.xlu1 %1294 }
 0x25d   : > { %4136 = vst [vmem:[#allocation18_spill] sm:$0xff] %v3585_v11 }
 0x25e   : > { %v1526_v28 = vrot.slane %v1518_v61, %v3220_v23  ;;  %v1533_v15 = vrot.slane %v1519_v1, %v3220_v23  ;;  %v1551_v61 = vcombine.high %v1485_v45, %v1501_v35  ;;  %v1558_v1 = vrot.slane %v1550_v10, %v3231_v40 }
 0x260   : > { %v1566_v7 = vcombine.low %v1510_v60, %v1526_v28  ;;  %v1567_v18 = vcombine.high %v1510_v60, %v1526_v28  ;;  %v3591_v16 = vpop.permute.xlu1 %1300  ;;  %v1582_v53 = vcombine.low %v1517_v8, %v1533_v15  ;;  %v1583_v19 = vcombine.high %v1517_v8, %v1533_v15 }
 0x261   : > { %4137 = vst [vmem:[#allocation19_spill] sm:$0xff] %v3591_v16  ;;  %v1565_v8 = vrot.slane %v1551_v61, %v3231_v40 }
 0x262   : > { %v1574_v38 = vrot.slane %v1566_v7, %v3231_v40  ;;  %v1581_v0 = vrot.slane %v1567_v18, %v3231_v40  ;;  %v1590_v60 = vrot.slane %v1582_v53, %v3231_v40  ;;  %v1597_v33 = vrot.slane %v1583_v19, %v3231_v40 }
 0x264   : > { %v3597_v56 = vpop.permute.xlu1 %1306  ;;  %v3599_v62 = vcombine.high %v1542_v49, %v1574_v38  ;;  %v3601_v41 = vcombine.low %v1542_v49, %v1574_v38  ;;  %v3607_v9 = vcombine.low %v1549_v59, %v1581_v0  ;;  %v3609_v20 = vcombine.high %v1549_v59, %v1581_v0 }
 0x265   : > { %4138 = vst [vmem:[#allocation20_spill] sm:$0xff] %v3597_v56  ;;  %v3615_v27 = vcombine.low %v1558_v1, %v1590_v60  ;;  %v3617_v28 = vcombine.high %v1558_v1, %v1590_v60  ;;  %v3623_v7 = vcombine.low %v1565_v8, %v1597_v33  ;;  %v3625_v18 = vcombine.high %v1565_v8, %v1597_v33 }
 0x266   : > { %1762 = vperm.xlu1 %2865, %v3599_v62   ;;  %1759 = vperm.xlu0 %2860, %v3601_v41  }
 0x268   : > { %v1425_v26 = vpop.permute.xlu1 %1424 }
 0x26a   : > { %1765 = vperm.xlu1 %2865, %v3607_v9   ;;  %1768 = vperm.xlu0 %2860, %v3609_v20  }
 0x26c   : > { %v1429_v25 = vpop.permute.xlu1 %1428 }
 0x26e   : > { %1771 = vperm.xlu1 %2865, %v3615_v27   ;;  %1774 = vperm.xlu0 %2860, %v3617_v28  }
 0x270   : > { %v1433_v15 = vpop.permute.xlu1 %1432 }
 0x271   : > { %v1606_v53 = vcombine.low %v1425_v26, %v1433_v15  ;;  %v1607_v56 = vcombine.high %v1425_v26, %v1433_v15 }
 0x272   : > { %1777 = vperm.xlu1 %2865, %v3623_v7   ;;  %1780 = vperm.xlu0 %2860, %v3625_v18  }
 0x273   : > { %v1614_v19 = vrot.slane %v1606_v53, %v3220_v23 }
 0x274   : > { %v1437_v35 = vpop.permute.xlu1 %1436 }
 0x275   : > { %v1622_v38 = vcombine.low %v1429_v25, %v1437_v35  ;;  %v1623_v1 = vcombine.high %v1429_v25, %v1437_v35  ;;  %v1621_v35 = vrot.slane %v1607_v56, %v3220_v23 }
 0x277   : > { %v1630_v0 = vrot.slane %v1622_v38, %v3220_v23  ;;  %v1637_v38 = vrot.slane %v1623_v1, %v3220_v23  ;;  %v4139_v1 = vmov 1  }
 0x278   : > { %v1441_v17 = vpop.permute.xlu1 %1440 }
 0x279   : > { %v1670_v33 = vcombine.low %v1614_v19, %v1630_v0  ;;  %v1671_v54 = vcombine.high %v1614_v19, %v1630_v0  ;;  %v1686_v15 = vcombine.low %v1621_v35, %v1637_v38  ;;  %v1687_v56 = vcombine.high %v1621_v35, %v1637_v38 }
 0x27b   : > { %v1678_v53 = vrot.slane %v1670_v33, %v3231_v40 }
 0x27c   : > { %v1445_v49 = vpop.permute.xlu1 %1444 }
 0x280   : > { %v1449_v45 = vpop.permute.xlu1 %1448 }
 0x281   : > { %v1638_v10 = vcombine.low %v1441_v17, %v1449_v45  ;;  %v1639_v8 = vcombine.high %v1441_v17, %v1449_v45 }
 0x283   : > { %v1646_v2 = vrot.slane %v1638_v10, %v3220_v23  ;;  %v1653_v50 = vrot.slane %v1639_v8, %v3220_v23 }
 0x284   : > { %v1453_v59 = vpop.permute.xlu1 %1452 }
 0x285   : > { %v1654_v60 = vcombine.low %v1445_v49, %v1453_v59  ;;  %v1655_v61 = vcombine.high %v1445_v49, %v1453_v59  ;;  %v1694_v59 = vrot.slane %v1686_v15, %v3231_v40 }
 0x287   : > { %v1662_v57 = vrot.slane %v1654_v60, %v3220_v23  ;;  %v1669_v16 = vrot.slane %v1655_v61, %v3220_v23  ;;  %v2021_v61 = vld [vmem:[%s3130_s4 + $0x8] sm:$0xff] }
 0x289   : > { %v1702_v11 = vcombine.low %v1646_v2, %v1662_v57  ;;  %v1703_v4 = vcombine.high %v1646_v2, %v1662_v57  ;;  %v1718_v17 = vcombine.low %v1653_v50, %v1669_v16  ;;  %v1685_v2 = vrot.slane %v1671_v54, %v3231_v40 }
 0x28a   : > { %v1719_v57 = vcombine.high %v1653_v50, %v1669_v16  ;;  %v1701_v50 = vrot.slane %v1687_v56, %v3231_v40 }
 0x28b   : > { %v1710_v25 = vrot.slane %v1702_v11, %v3231_v40  ;;  %v1717_v26 = vrot.slane %v1703_v4, %v3231_v40  ;;  %v1726_v11 = vrot.slane %v1718_v17, %v3231_v40 }
 0x28c   : > { %v1733_v60 = vrot.slane %v1719_v57, %v3231_v40 }
 0x28d   : > { %v3639_v49 = vcombine.low %v1678_v53, %v1710_v25  ;;  %v1735_v45 = vcombine.high %v1678_v53, %v1710_v25  ;;  %v3644_v0 = vcombine.low %v1685_v2, %v1717_v26  ;;  %v1737_v10 = vcombine.high %v1685_v2, %v1717_v26 }
 0x28e   : > { %v3649_v4 = vcombine.low %v1694_v59, %v1726_v11  ;;  %v1739_v19 = vcombine.high %v1694_v59, %v1726_v11  ;;  %v3654_v54 = vcombine.low %v1701_v50, %v1733_v60  ;;  %v1741_v16 = vcombine.high %v1701_v50, %v1733_v60 }
 0x28f   : > { %1783 = vperm.xlu1 %2865, %v3639_v49   ;;  %1786 = vperm.xlu0 %2860, %v1735_v45  }
 0x293   : > { %1789 = vperm.xlu1 %2865, %v3644_v0   ;;  %1792 = vperm.xlu0 %2860, %v1737_v10  }
 0x297   : > { %1795 = vperm.xlu1 %2865, %v3649_v4   ;;  %1798 = vperm.xlu0 %2860, %v1739_v19  }
 0x29b   : > { %1801 = vperm.xlu1 %2865, %v3654_v54   ;;  %1804 = vperm.xlu0 %2860, %v1741_v16  }
 0x29f   : > { %2866 = vset.pattern.permute.xlu1 %v4139_v1  ;;  %2026 = vrot.lane.b32.xlu0 %v2021_v61, %s2988_s29 }
 0x2a0   : > { %1890 = vperm.xlu1 %2866, %v3601_v41   ;;  %v2020_v41 = vld [vmem:[%s3130_s4] sm:$0xff]  ;;  %s2900_s4 = scalar_lea.vmem %s4059_s24, 1024 }
 0x2a1   : > { %p2901_p8 = scmp.ne.s32.totalorder %s4059_s24, %s2900_s4 }
 0x2a3   : > { %2030 = vrot.lane.b32.xlu0 %v2021_v61, %s2987_s27  ;;  %p2902_p11 = pnand %p2901_p8, %p4172_p9 }
 0x2a4   : > { %1896 = vperm.xlu1 %2866, %v3607_v9   ;;  %v4140_v9 = vmov 0  }
 0x2a5   : > { %p2903_p0 = pneg %p2902_p11 }
 0x2a7   : > { %2034 = vrot.lane.b32.xlu0 %v2021_v61, %s2989_s18 }
 0x2a8   : > { %1899 = vperm.xlu1 %2866, %v3609_v20  }
 0x2ab   : > { %2038 = vrot.lane.b32.xlu0 %v2021_v61, %s2990_s30 }
 0x2ac   : > { %1905 = vperm.xlu1 %2866, %v3617_v28  }
 0x2af   : > { %2042 = vrot.lane.b32.xlu0 %v2021_v61, %s2991_s2 }
 0x2b0   : > { %1911 = vperm.xlu1 %2866, %v3625_v18  }
 0x2b3   : > { %2046 = vrot.lane.b32.xlu0 %v2021_v61, %s2992_s5 }
 0x2b4   : > { %1917 = vperm.xlu1 %2866, %v1735_v45  }
 0x2b7   : > { %2050 = vrot.lane.b32.xlu0 %v2021_v61, %s2994_s12 }
 0x2b8   : > { %1923 = vperm.xlu1 %2866, %v1737_v10  }
 0x2bb   : > { %2052 = vrot.lane.b32.xlu0 %v2020_v41, %s3000_s22 }
 0x2bc   : > { %2024 = vrot.lane.b32.xlu1 %v2020_v41, %s2988_s29 }
 0x2c0   : > { %2028 = vrot.lane.b32.xlu1 %v2020_v41, %s2987_s27  ;;  %s3001_s27 = smov [#allocation5]  }
 0x2c1   : > { %s2904_s29 = sshll.u32 %s3001_s27, 4  ;;  %s2905_s29 = int_to_ptr.vmem [resolvable:$false] %s2904_s29 }
 0x2c2   : > { %p2907_p6 = scmp.lt.s32.totalorder %s4059_s24, %s2905_s29 }
 0x2c4   : > { %2032 = vrot.lane.b32.xlu1 %v2020_v41, %s2989_s18  ;;  %s2906_s18 = scalar_lea.vmem %s2905_s29, 2048 }
 0x2c5   : > { %p2908_p13 = scmp.lt.s32.totalorder %s2906_s18, %s2900_s4 }
 0x2c7   : > { %p2909_p2 = por %p2908_p13, %p2907_p6 }
 0x2c8   : > { %2036 = vrot.lane.b32.xlu1 %v2020_v41, %s2990_s30 }
 0x2c9   : > { %p2910_p5 = pnand %p2909_p2, %p2903_p0 }
 0x2cc   : > { %2040 = vrot.lane.b32.xlu1 %v2020_v41, %s2991_s2 }
 0x2d0   : > { %2044 = vrot.lane.b32.xlu1 %v2020_v41, %s2992_s5 }
 0x2d4   : > { %2048 = vrot.lane.b32.xlu1 %v2020_v41, %s2994_s12 }
 0x2d8   : > { %1929 = vperm.xlu1 %2866, %v1739_v19  }
 0x2dc   : > { %1935 = vperm.xlu1 %2866, %v1741_v16  }
 0x2e0   : > { %2054 = vrot.lane.b32.xlu1 %v2021_v61, %s3000_s22 }
 0x2e1   : > { %2867 = vset.pattern.permute.xlu1 %v4140_v9 }
 0x2e5   : > { %v1763_v20 = vpop.permute.xlu1 %1762  ;;  %v1760_v28 = vpop.permute.xlu0 %1759 }
 0x2e6   : > { %v1813_v18 = vrot.slane %v1763_v20, %v3367_v21  ;;  %v1809_v33 = vrot.slane %v1760_v28, %v3367_v21 }
 0x2e8   : > { %v1870_v25 = vsel %vm603_vm0, %v1813_v18, %v1809_v33 }
 0x2e9   : > { %v1766_v8 = vpop.permute.xlu1 %1765  ;;  %v1769_v38 = vpop.permute.xlu0 %1768 }
 0x2ea   : > { %v1817_v53 = vrot.slane %v1766_v8, %v3367_v21  ;;  %v1821_v35 = vrot.slane %v1769_v38, %v3367_v21 }
 0x2ec   : > { %v1871_v17 = vsel %vm605_vm1, %v1817_v53, %v1870_v25 }
 0x2ed   : > { %v1772_v45 = vpop.permute.xlu1 %1771  ;;  %v1775_v26 = vpop.permute.xlu0 %1774  ;;  %v1872_v2 = vsel %vm607_vm2, %v1821_v35, %v1871_v17 }
 0x2ee   : > { %v1825_v15 = vrot.slane %v1772_v45, %v3367_v21  ;;  %v1829_v57 = vrot.slane %v1775_v26, %v3367_v21 }
 0x2f0   : > { %v1873_v10 = vsel %vm609_vm3, %v1825_v15, %v1872_v2 }
 0x2f1   : > { %v1778_v11 = vpop.permute.xlu1 %1777  ;;  %v1781_v56 = vpop.permute.xlu0 %1780  ;;  %v1874_v60 = vsel %vm611_vm4, %v1829_v57, %v1873_v10 }
 0x2f2   : > { %v1833_v59 = vrot.slane %v1778_v11, %v3367_v21  ;;  %v1837_v19 = vrot.slane %v1781_v56, %v3367_v21 }
 0x2f4   : > { %v1875_v50 = vsel %vm613_vm5, %v1833_v59, %v1874_v60 }
 0x2f5   : > { %v1876_v16 = vsel %vm615_vm6, %v1837_v19, %v1875_v50 }
 0x2f6   : > { %2765 = vst.msk [vmem:[%s3385_s17 + $0x20] sm:$0xff] %vm626_vm7, %v1876_v16 }
 0x30e   : > { %v1784_v61 = vpop.permute.xlu1 %1783  ;;  %v1787_v41 = vpop.permute.xlu0 %1786 }
 0x30f   : > { %v1841_v9 = vrot.slane %v1784_v61, %v3367_v21  ;;  %v1845_v20 = vrot.slane %v1787_v41, %v3367_v21 }
 0x311   : > { %v1877_v8 = vsel %vm603_vm0, %v1845_v20, %v1841_v9 }
 0x312   : > { %v1790_v28 = vpop.permute.xlu1 %1789  ;;  %v1793_v18 = vpop.permute.xlu0 %1792 }
 0x313   : > { %v1849_v33 = vrot.slane %v1790_v28, %v3367_v21  ;;  %v1853_v38 = vrot.slane %v1793_v18, %v3367_v21 }
 0x315   : > { %v1878_v53 = vsel %vm605_vm1, %v1849_v33, %v1877_v8 }
 0x316   : > { %v1796_v25 = vpop.permute.xlu1 %1795  ;;  %v1799_v35 = vpop.permute.xlu0 %1798  ;;  %v1879_v45 = vsel %vm607_vm2, %v1853_v38, %v1878_v53 }
 0x317   : > { %v1857_v17 = vrot.slane %v1796_v25, %v3367_v21  ;;  %v1861_v26 = vrot.slane %v1799_v35, %v3367_v21 }
 0x319   : > { %v1880_v15 = vsel %vm609_vm3, %v1857_v17, %v1879_v45 }
 0x31a   : > { %v1802_v2 = vpop.permute.xlu1 %1801  ;;  %v1805_v57 = vpop.permute.xlu0 %1804  ;;  %v1881_v56 = vsel %vm611_vm4, %v1861_v26, %v1880_v15 }
 0x31b   : > { %v1865_v10 = vrot.slane %v1802_v2, %v3367_v21  ;;  %v1869_v11 = vrot.slane %v1805_v57, %v3367_v21 }
 0x31d   : > { %v1882_v59 = vsel %vm613_vm5, %v1865_v10, %v1881_v56 }
 0x31e   : > { %v1883_v19 = vsel %vm615_vm6, %v1869_v11, %v1882_v59  ;;  %v2027_v60 = vpop.permute.xlu0 %2026 }
 0x31f   : > { %2766 = vst.msk [vmem:[%s3385_s17 + $0x28] sm:$0xff] %vm626_vm7, %v1883_v19  ;;  %v3716_v50 = vpop.permute.xlu1 %1890  ;;  %2058 = vrot.lane.b32.xlu1 %v2027_v60, %s3000_s22 }
 0x320   : > { %4141 = vst [vmem:[#allocation21_spill] sm:$0xff] %v3716_v50 }
 0x322   : > { %v2031_v16 = vpop.permute.xlu0 %2030 }
 0x323   : > { %v3719_v61 = vpop.permute.xlu1 %1896  ;;  %2062 = vrot.lane.b32.xlu1 %v2031_v16, %s3000_s22 }
 0x324   : > { %4142 = vst [vmem:[#allocation22_spill] sm:$0xff] %v3719_v61 }
 0x326   : > { %v2035_v41 = vpop.permute.xlu0 %2034 }
 0x327   : > { %v3722_v9 = vpop.permute.xlu1 %1899  ;;  %2066 = vrot.lane.b32.xlu1 %v2035_v41, %s3000_s22 }
 0x328   : > { %4143 = vst [vmem:[#allocation23_spill] sm:$0xff] %v3722_v9 }
 0x32a   : > { %v2039_v20 = vpop.permute.xlu0 %2038 }
 0x32b   : > { %v3725_v28 = vpop.permute.xlu1 %1905  ;;  %2070 = vrot.lane.b32.xlu1 %v2039_v20, %s3000_s22 }
 0x32c   : > { %4144 = vst [vmem:[#allocation24_spill] sm:$0xff] %v3725_v28 }
 0x32e   : > { %v2043_v18 = vpop.permute.xlu0 %2042 }
 0x32f   : > { %v3728_v33 = vpop.permute.xlu1 %1911  ;;  %2074 = vrot.lane.b32.xlu1 %v2043_v18, %s3000_s22 }
 0x330   : > { %4145 = vst [vmem:[#allocation25_spill] sm:$0xff] %v3728_v33 }
 0x332   : > { %v2047_v8 = vpop.permute.xlu0 %2046 }
 0x333   : > { %v3731_v38 = vpop.permute.xlu1 %1917  ;;  %2078 = vrot.lane.b32.xlu1 %v2047_v8, %s3000_s22 }
 0x334   : > { %4146 = vst [vmem:[#allocation26_spill] sm:$0xff] %v3731_v38 }
 0x336   : > { %v2051_v53 = vpop.permute.xlu0 %2050 }
 0x337   : > { %v3734_v25 = vpop.permute.xlu1 %1923  ;;  %2082 = vrot.lane.b32.xlu1 %v2051_v53, %s3000_s22 }
 0x338   : > { %4147 = vst [vmem:[#allocation27_spill] sm:$0xff] %v3734_v25 }
 0x33a   : > { %v2053_v19 = vpop.permute.xlu0 %2052 }
 0x33b   : > { %v2025_v35 = vpop.permute.xlu1 %2024 }
 0x33c   : > { %2056 = vrot.lane.b32.xlu0 %v2025_v35, %s3000_s22 }
 0x33f   : > { %v2029_v17 = vpop.permute.xlu1 %2028 }
 0x340   : > { %2060 = vrot.lane.b32.xlu0 %v2029_v17, %s3000_s22 }
 0x343   : > { %v2033_v45 = vpop.permute.xlu1 %2032 }
 0x344   : > { %2064 = vrot.lane.b32.xlu0 %v2033_v45, %s3000_s22 }
 0x347   : > { %v2037_v26 = vpop.permute.xlu1 %2036 }
 0x348   : > { %2068 = vrot.lane.b32.xlu0 %v2037_v26, %s3000_s22 }
 0x34b   : > { %v2041_v15 = vpop.permute.xlu1 %2040 }
 0x34c   : > { %2072 = vrot.lane.b32.xlu0 %v2041_v15, %s3000_s22 }
 0x34f   : > { %v2045_v2 = vpop.permute.xlu1 %2044 }
 0x350   : > { %2076 = vrot.lane.b32.xlu0 %v2045_v2, %s3000_s22 }
 0x353   : > { %v2049_v57 = vpop.permute.xlu1 %2048 }
 0x354   : > { %2080 = vrot.lane.b32.xlu0 %v2049_v57, %s3000_s22 }
 0x357   : > { %v3744_v10 = vpop.permute.xlu1 %1929 }
 0x358   : > { %4148 = vst [vmem:[#allocation28_spill] sm:$0xff] %v3744_v10 }
 0x35b   : > { %v3746_v11 = vpop.permute.xlu1 %1935 }
 0x35c   : > { %4149 = vst [vmem:[#allocation29_spill] sm:$0xff] %v3746_v11 }
 0x35f   : > { %v3748_v56 = vpop.permute.xlu1 %2054 }
 0x391   : > { %v3750_v59 = vpop.permute.xlu1 %2058 }
 0x395   : > { %v3752_v60 = vpop.permute.xlu1 %2062 }
 0x399   : > { %v3754_v20 = vpop.permute.xlu1 %2066 }
 0x39d   : > { %v3756_v8 = vpop.permute.xlu1 %2070 }
 0x3a1   : > { %v3758_v17 = vpop.permute.xlu1 %2074 }
 0x3a5   : > { %v3760_v2 = vpop.permute.xlu1 %2078 }
 0x3a9   : > { %v2083_v39 = vpop.permute.xlu1 %2082 }
 0x3ae   : > { %v2057_v16 = vpop.permute.xlu0 %2056 }
 0x3b2   : > { %v2061_v41 = vpop.permute.xlu0 %2060 }
 0x3b3   : > { %v2100_v15 = vcombine.low %v2053_v19, %v2061_v41  ;;  %v2101_v42 = vcombine.high %v2053_v19, %v2061_v41 }
 0x3b5   : > { %v2108_v25 = vrot.slane %v2100_v15, %v3220_v23  ;;  %v2115_v19 = vrot.slane %v2101_v42, %v3220_v23 }
 0x3b6   : > { %v2065_v18 = vpop.permute.xlu0 %2064 }
 0x3b7   : > { %v2116_v45 = vcombine.low %v2057_v16, %v2065_v18  ;;  %v2117_v28 = vcombine.high %v2057_v16, %v2065_v18 }
 0x3b9   : > { %v2124_v57 = vrot.slane %v2116_v45, %v3220_v23  ;;  %v2236_v45 = vcombine.low %v3748_v56, %v3752_v60  ;;  %v2131_v15 = vrot.slane %v2117_v28, %v3220_v23 }
 0x3ba   : > { %v2069_v53 = vpop.permute.xlu0 %2068 }
 0x3bb   : > { %v2164_v9 = vcombine.low %v2108_v25, %v2124_v57  ;;  %v2165_v46 = vcombine.high %v2108_v25, %v2124_v57  ;;  %v2244_v42 = vrot.slane %v2236_v45, %v3220_v23  ;;  %v2181_v45 = vcombine.high %v2115_v19, %v2131_v15 }
 0x3be   : > { %v2073_v35 = vpop.permute.xlu0 %2072 }
 0x3c2   : > { %v2077_v26 = vpop.permute.xlu0 %2076 }
 0x3c3   : > { %v2132_v11 = vcombine.low %v2069_v53, %v2077_v26  ;;  %v2133_v61 = vcombine.high %v2069_v53, %v2077_v26 }
 0x3c5   : > { %v2140_v50 = vrot.slane %v2132_v11, %v3220_v23  ;;  %v2147_v16 = vrot.slane %v2133_v61, %v3220_v23  ;;  %v2179_v61 = vrot.slane %v2165_v46, %v3231_v40  ;;  %v2237_v46 = vcombine.high %v3748_v56, %v3752_v60 }
 0x3c6   : > { %v2081_v10 = vpop.permute.xlu0 %2080 }
 0x3c7   : > { %v2148_v38 = vcombine.low %v2073_v35, %v2081_v10  ;;  %v2149_v33 = vcombine.high %v2073_v35, %v2081_v10  ;;  %v2172_v10 = vrot.slane %v2164_v9, %v3231_v40 }
 0x3c9   : > { %v2156_v47 = vrot.slane %v2148_v38, %v3220_v23  ;;  %v2163_v29 = vrot.slane %v2149_v33, %v3220_v23  ;;  %v2252_v38 = vcombine.low %v3750_v59, %v3754_v20 }
 0x3cb   : > { %v2196_v63 = vcombine.low %v2140_v50, %v2156_v47  ;;  %v2197_v12 = vcombine.high %v2140_v50, %v2156_v47  ;;  %v2268_v47 = vcombine.low %v3756_v8, %v3760_v2  ;;  %v2284_v50 = vcombine.low %v3758_v17, %v2083_v39 }
 0x3cc   : > { %v2212_v28 = vcombine.low %v2147_v16, %v2163_v29  ;;  %v2260_v41 = vrot.slane %v2252_v38, %v3220_v23  ;;  %v2213_v53 = vcombine.high %v2147_v16, %v2163_v29  ;;  %v2269_v16 = vcombine.high %v3756_v8, %v3760_v2 }
 0x3cd   : > { %v2204_v11 = vrot.slane %v2196_v63, %v3231_v40  ;;  %v2211_v33 = vrot.slane %v2197_v12, %v3231_v40  ;;  %v2180_v63 = vcombine.low %v2115_v19, %v2131_v15  ;;  %v2276_v18 = vrot.slane %v2268_v47, %v3220_v23 }
 0x3ce   : > { %v2292_v12 = vrot.slane %v2284_v50, %v3220_v23  ;;  %v2220_v35 = vrot.slane %v2212_v28, %v3231_v40  ;;  %v2300_v29 = vcombine.low %v2244_v42, %v2260_v41  ;;  %v2285_v38 = vcombine.high %v3758_v17, %v2083_v39 }
 0x3cf   : > { %v3780_v25 = vcombine.high %v2172_v10, %v2204_v11  ;;  %v3782_v9 = vcombine.low %v2172_v10, %v2204_v11  ;;  %v3792_v26 = vcombine.low %v2179_v61, %v2211_v33  ;;  %v3794_v57 = vcombine.high %v2179_v61, %v2211_v33 }
 0x3d0   : > { %v2253_v10 = vcombine.high %v3750_v59, %v3754_v20  ;;  %v2188_v11 = vrot.slane %v2180_v63, %v3231_v40  ;;  %v2332_v47 = vcombine.low %v2276_v18, %v2292_v12  ;;  %v2227_v50 = vrot.slane %v2213_v53, %v3231_v40 }
 0x3d1   : > { %2392 = vperm.xlu1 %2867, %v3780_v25   ;;  %2389 = vperm.xlu0 %2860, %v3782_v9   ;;  %v2251_v59 = vrot.slane %v2237_v46, %v3220_v23  ;;  %v2195_v15 = vrot.slane %v2181_v45, %v3231_v40  ;;  %v2301_v8 = vcombine.high %v2244_v42, %v2260_v41 }
 0x3d2   : > { %v3807_v56 = vcombine.low %v2188_v11, %v2220_v35  ;;  %v3809_v60 = vcombine.high %v2188_v11, %v2220_v35  ;;  %v2267_v20 = vrot.slane %v2253_v10, %v3220_v23  ;;  %v2308_v39 = vrot.slane %v2300_v29, %v3231_v40 }
 0x3d3   : > { %v2283_v17 = vrot.slane %v2269_v16, %v3220_v23  ;;  %v2299_v2 = vrot.slane %v2285_v38, %v3220_v23  ;;  %v2333_v19 = vcombine.high %v2276_v18, %v2292_v12  ;;  %v2340_v33 = vrot.slane %v2332_v47, %v3231_v40 }
 0x3d4   : > { %v2234_v28 = vcombine.low %v2195_v15, %v2227_v50  ;;  %v2235_v61 = vcombine.high %v2195_v15, %v2227_v50  ;;  %v2315_v63 = vrot.slane %v2301_v8, %v3231_v40  ;;  %v2316_v53 = vcombine.low %v2251_v59, %v2267_v20 }
 0x3d5   : > { %2395 = vperm.xlu1 %2867, %v3792_v26   ;;  %2398 = vperm.xlu0 %2860, %v3794_v57   ;;  %v2347_v35 = vrot.slane %v2333_v19, %v3231_v40  ;;  %v2348_v46 = vcombine.low %v2283_v17, %v2299_v2  ;;  %v2364_v42 = vcombine.low %v2308_v39, %v2340_v33 }
 0x3d6   : > { %v2365_v41 = vcombine.high %v2308_v39, %v2340_v33  ;;  %v2317_v10 = vcombine.high %v2251_v59, %v2267_v20  ;;  %v2324_v23 = vrot.slane %v2316_v53, %v3231_v40  ;;  %v2349_v18 = vcombine.high %v2283_v17, %v2299_v2 }
 0x3d7   : > { %v2356_v12 = vrot.slane %v2348_v46, %v3231_v40  ;;  %v2366_v45 = vcombine.low %v2315_v63, %v2347_v35  ;;  %v2367_v11 = vcombine.high %v2315_v63, %v2347_v35 }
 0x3d8   : > { %v2331_v29 = vrot.slane %v2317_v10, %v3231_v40  ;;  %v2363_v16 = vrot.slane %v2349_v18, %v3231_v40  ;;  %v680_v18 = vrot.slane %v3401_v24, %v3367_v21 }
 0x3d9   : > { %2401 = vperm.xlu1 %2867, %v3807_v56   ;;  %2404 = vperm.xlu0 %2860, %v3809_v60   ;;  %v2368_v38 = vcombine.low %v2324_v23, %v2356_v12  ;;  %v2369_v47 = vcombine.high %v2324_v23, %v2356_v12 }
 0x3da   : > { %v2370_v50 = vcombine.low %v2331_v29, %v2363_v16  ;;  %v2371_v59 = vcombine.high %v2331_v29, %v2363_v16 }
 0x3dd   : > { %2407 = vperm.xlu1 %2867, %v2234_v28   ;;  %2410 = vperm.xlu0 %2860, %v2235_v61  }
 0x3e1   : > { %2413 = vperm.xlu1 %2867, %v2364_v42   ;;  %2416 = vperm.xlu0 %2860, %v2365_v41  }
 0x3e5   : > { %2419 = vperm.xlu1 %2867, %v2366_v45   ;;  %2422 = vperm.xlu0 %2860, %v2367_v11  }
 0x3e9   : > { %2425 = vperm.xlu1 %2867, %v2368_v38   ;;  %2428 = vperm.xlu0 %2860, %v2369_v47  }
 0x3ed   : > { %2868 = vset.pattern.permute.xlu1 %v4139_v1  ;;  %2431 = vperm.xlu0 %2860, %v2370_v50  }
 0x3ee   : > { %2519 = vperm.xlu1 %2868, %v3782_v9  }
 0x3f1   : > { %2434 = vperm.xlu0 %2860, %v2371_v59  }
 0x3f2   : > { %2543 = vperm.xlu1 %2868, %v2364_v42  }
 0x3f5   : > { %2869 = vset.pattern.permute.xlu0 %v4139_v1 }
 0x3f6   : > { %2546 = vperm.xlu1 %2868, %v2365_v41   ;;  %633 = vperm.xlu0 %2869, %v3245_v55  }
 0x3fa   : > { %2549 = vperm.xlu1 %2868, %v2366_v45   ;;  %642 = vperm.xlu0 %2869, %v3268_v22   ;;  %v688_v45 = vrot.slane %v3408_v30, %v3367_v21 }
 0x3fe   : > { %2552 = vperm.xlu1 %2868, %v2367_v11   ;;  %648 = vperm.xlu0 %2869, %v3280_v32   ;;  %v692_v11 = vrot.slane %v3410_v14, %v3367_v21  ;;  %v708_v14 = vrot.slane %v3420_v5, %v3367_v21 }
 0x402   : > { %2555 = vperm.xlu1 %2868, %v2368_v38   ;;  %654 = vperm.xlu0 %2869, %v3288_v36  }
 0x406   : > { %2558 = vperm.xlu1 %2868, %v2369_v47   ;;  %660 = vperm.xlu0 %2869, %v3293_v43  }
 0x40a   : > { %2537 = vperm.xlu1 %2868, %v2234_v28   ;;  %666 = vperm.xlu0 %2869, %v3298_v48  }
 0x40e   : > { %2561 = vperm.xlu1 %2868, %v2370_v50   ;;  %672 = vperm.xlu0 %2869, %v3303_v52  }
 0x412   : > { %2540 = vperm.xlu1 %2868, %v2235_v61   ;;  %1264 = vperm.xlu0 %2869, %v3438_v58  }
 0x416   : > { %1273 = vperm.xlu0 %2869, %v3458_v13  }
 0x41a   : > { %1279 = vperm.xlu0 %2869, %v3466_v34  }
 0x41e   : > { %1285 = vperm.xlu0 %2869, %v3488_v31  }
 0x422   : > { %1291 = vperm.xlu0 %2869, %v3493_v37  }
 0x426   : > { %1297 = vperm.xlu0 %2869, %v3498_v44  }
 0x42a   : > { %1303 = vperm.xlu0 %2869, %v3503_v51  }
 0x42e   : > { %1893 = vperm.xlu0 %2869, %v3599_v62  }
 0x432   : > { %1902 = vperm.xlu0 %2869, %v3615_v27  }
 0x436   : > { %1908 = vperm.xlu0 %2869, %v3623_v7  }
 0x43a   : > { %1914 = vperm.xlu0 %2869, %v3639_v49  }
 0x43e   : > { %1920 = vperm.xlu0 %2869, %v3644_v0  }
 0x442   : > { %1926 = vperm.xlu0 %2869, %v3649_v4  }
 0x446   : > { %1932 = vperm.xlu0 %2869, %v3654_v54  }
 0x44a   : > { %2522 = vperm.xlu0 %2869, %v3780_v25  }
 0x44e   : > { %2525 = vperm.xlu0 %2869, %v3792_v26  }
 0x450   : > { %v2393_v40 = vpop.permute.xlu1 %2392  ;;  %v2390_v55 = vpop.permute.xlu0 %2389 }
 0x451   : > { %v2443_v22 = vrot.slane %v2393_v40, %v3533_v3  ;;  %v2439_v32 = vrot.slane %v2390_v55, %v3533_v3 }
 0x452   : > { %2528 = vperm.xlu0 %2869, %v3794_v57  }
 0x453   : > { %v2500_v52 = vsel %vm603_vm0, %v2443_v22, %v2439_v32 }
 0x454   : > { %v2396_v36 = vpop.permute.xlu1 %2395  ;;  %v2399_v43 = vpop.permute.xlu0 %2398 }
 0x455   : > { %v2447_v48 = vrot.slane %v2396_v36, %v3533_v3  ;;  %v2451_v58 = vrot.slane %v2399_v43, %v3533_v3 }
 0x456   : > { %2531 = vperm.xlu0 %2869, %v3807_v56  }
 0x457   : > { %v2501_v13 = vsel %vm605_vm1, %v2447_v48, %v2500_v52  ;;  %v4150_v48 = vld [vmem:[#allocation8_spill] sm:$0xff] }
 0x458   : > { %v2402_v34 = vpop.permute.xlu1 %2401  ;;  %v2405_v31 = vpop.permute.xlu0 %2404  ;;  %v2502_v44 = vsel %vm607_vm2, %v2451_v58, %v2501_v13 }
 0x459   : > { %v2455_v37 = vrot.slane %v2402_v34, %v3533_v3  ;;  %v2459_v51 = vrot.slane %v2405_v31, %v3533_v3  ;;  %v4151_v34 = vld [vmem:[#allocation9_spill] sm:$0xff] }
 0x45a   : > { %2534 = vperm.xlu0 %2869, %v3809_v60   ;;  %v724_v31 = vrot.slane %v4151_v34, %v3367_v21 }
 0x45b   : > { %v2503_v62 = vsel %vm609_vm3, %v2455_v37, %v2502_v44 }
 0x45c   : > { %v2408_v27 = vpop.permute.xlu1 %2407  ;;  %v2411_v7 = vpop.permute.xlu0 %2410  ;;  %v2504_v4 = vsel %vm611_vm4, %v2459_v51, %v2503_v62 }
 0x45d   : > { %v2463_v49 = vrot.slane %v2408_v27, %v3533_v3  ;;  %v2467_v0 = vrot.slane %v2411_v7, %v3533_v3  ;;  %v4152_v27 = vld [vmem:[#allocation10_spill] sm:$0xff] }
 0x45e   : > { %2564 = vperm.xlu0 %2869, %v2371_v59   ;;  %v700_v59 = vrot.slane %v3416_v6, %v3367_v21  ;;  %v716_v6 = vrot.slane %v4150_v48, %v3367_v21  ;;  %v732_v7 = vrot.slane %v4152_v27, %v3367_v21 }
 0x45f   : > { %v2505_v54 = vsel %vm613_vm5, %v2463_v49, %v2504_v4  ;;  %v4153_v4 = vld [vmem:[#allocation11_spill] sm:$0xff] }
 0x460   : > { %v2506_v1 = vsel %vm615_vm6, %v2467_v0, %v2505_v54  ;;  %v2414_v25 = vpop.permute.xlu1 %2413  ;;  %v2417_v9 = vpop.permute.xlu0 %2416  ;;  %v740_v54 = vrot.slane %v4153_v4, %v3367_v21 }
 0x461   : > { %2769 = vst.msk [vmem:[%s3385_s17 + $0x20] sm:$0xff] %vm1257_vm8, %v2506_v1  ;;  %v2471_v56 = vrot.slane %v2414_v25, %v3533_v3  ;;  %v2475_v60 = vrot.slane %v2417_v9, %v3533_v3 }
 0x463   : > { %v2507_v39 = vsel %vm603_vm0, %v2475_v60, %v2471_v56 }
 0x464   : > { %v2420_v26 = vpop.permute.xlu1 %2419  ;;  %v2423_v57 = vpop.permute.xlu0 %2422 }
 0x465   : > { %v2479_v20 = vrot.slane %v2420_v26, %v3533_v3  ;;  %v2483_v17 = vrot.slane %v2423_v57, %v3533_v3  ;;  %v4154_v57 = vld [vmem:[#allocation12_spill] sm:$0xff] }
 0x466   : > { %v1311_v56 = vrot.slane %v4154_v57, %v3533_v3 }
 0x467   : > { %v2508_v2 = vsel %vm605_vm1, %v2479_v20, %v2507_v39  ;;  %v4155_v20 = vld [vmem:[#allocation13_spill] sm:$0xff] }
 0x468   : > { %v2426_v15 = vpop.permute.xlu1 %2425  ;;  %v2429_v8 = vpop.permute.xlu0 %2428  ;;  %v2509_v28 = vsel %vm607_vm2, %v2483_v17, %v2508_v2 }
 0x469   : > { %v2487_v19 = vrot.slane %v2426_v15, %v3533_v3  ;;  %v2491_v61 = vrot.slane %v2429_v8, %v3533_v3  ;;  %v1319_v15 = vrot.slane %v4155_v20, %v3533_v3  ;;  %v4156_v8 = vld [vmem:[#allocation14_spill] sm:$0xff] }
 0x46a   : > { %v1323_v39 = vrot.slane %v4156_v8, %v3533_v3 }
 0x46b   : > { %v2510_v63 = vsel %vm609_vm3, %v2487_v19, %v2509_v28 }
 0x46c   : > { %v2432_v33 = vpop.permute.xlu0 %2431  ;;  %v2511_v46 = vsel %vm611_vm4, %v2491_v61, %v2510_v63  ;;  %v4157_v63 = vld [vmem:[#allocation15_spill] sm:$0xff] }
 0x46d   : > { %v2495_v53 = vrot.slane %v2432_v33, %v3533_v3 }
 0x46f   : > { %v2512_v41 = vsel %vm613_vm5, %v2495_v53, %v2511_v46  ;;  %v1331_v53 = vrot.slane %v4157_v63, %v3533_v3  ;;  %v4168_v63 = vld [vmem:[#allocation26_spill] sm:$0xff] }
 0x470   : > { %v2435_v35 = vpop.permute.xlu0 %2434 }
 0x471   : > { %v2499_v42 = vrot.slane %v2435_v35, %v3533_v3 }
 0x473   : > { %v2513_v10 = vsel %vm615_vm6, %v2499_v42, %v2512_v41  ;;  %v4158_v42 = vld [vmem:[#allocation16_spill] sm:$0xff] }
 0x474   : > { %2770 = vst.msk [vmem:[%s3385_s17 + $0x28] sm:$0xff] %vm1257_vm8, %v2513_v10  ;;  %v1339_v41 = vrot.slane %v4158_v42, %v3533_v3  ;;  %v4169_v42 = vld [vmem:[#allocation27_spill] sm:$0xff] }
 0x475   : > { %v634_v23 = vpop.permute.xlu0 %633 }
 0x476   : > { %v684_v12 = vrot.slane %v634_v23, %v3367_v21 }
 0x478   : > { %v741_v29 = vsel %vm603_vm0, %v684_v12, %v680_v18 }
 0x479   : > { %v742_v16 = vsel %vm605_vm1, %v688_v45, %v741_v29  ;;  %v643_v38 = vpop.permute.xlu0 %642 }
 0x47a   : > { %v743_v47 = vsel %vm607_vm2, %v692_v11, %v742_v16  ;;  %v696_v50 = vrot.slane %v643_v38, %v3367_v21  ;;  %v4159_v11 = vld [vmem:[#allocation17_spill] sm:$0xff] }
 0x47b   : > { %v1347_v29 = vrot.slane %v4159_v11, %v3533_v3 }
 0x47c   : > { %v744_v24 = vsel %vm609_vm3, %v696_v50, %v743_v47  ;;  %v3958_v47 = vpop.permute.xlu1 %2519 }
 0x47d   : > { %v649_v40 = vpop.permute.xlu0 %648  ;;  %v745_v55 = vsel %vm611_vm4, %v700_v59, %v744_v24  ;;  %v4160_v59 = vld [vmem:[#allocation18_spill] sm:$0xff] }
 0x47e   : > { %v704_v30 = vrot.slane %v649_v40, %v3367_v21  ;;  %v1355_v40 = vrot.slane %v4160_v59, %v3533_v3 }
 0x480   : > { %v746_v22 = vsel %vm613_vm5, %v704_v30, %v745_v55 }
 0x481   : > { %v747_v32 = vsel %vm615_vm6, %v708_v14, %v746_v22  ;;  %v655_v36 = vpop.permute.xlu0 %654 }
 0x482   : > { %2761 = vst.msk [vmem:[%s3385_s17 + $0x10] sm:$0xff] %vm626_vm7, %v747_v32  ;;  %v712_v43 = vrot.slane %v655_v36, %v3367_v21  ;;  %v4161_v32 = vld [vmem:[#allocation19_spill] sm:$0xff] }
 0x483   : > { %v1363_v36 = vrot.slane %v4161_v32, %v3533_v3 }
 0x484   : > { %v748_v13 = vsel %vm603_vm0, %v716_v6, %v712_v43  ;;  %v3969_v43 = vpop.permute.xlu1 %2543 }
 0x485   : > { %v661_v52 = vpop.permute.xlu0 %660 }
 0x486   : > { %v720_v58 = vrot.slane %v661_v52, %v3367_v21  ;;  %v4162_v52 = vld [vmem:[#allocation20_spill] sm:$0xff] }
 0x488   : > { %v749_v5 = vsel %vm605_vm1, %v720_v58, %v748_v13  ;;  %v1371_v58 = vrot.slane %v4162_v52, %v3533_v3 }
 0x489   : > { %v667_v37 = vpop.permute.xlu0 %666  ;;  %v750_v51 = vsel %vm607_vm2, %v724_v31, %v749_v5 }
 0x48a   : > { %v728_v44 = vrot.slane %v667_v37, %v3367_v21  ;;  %v4163_v37 = vld [vmem:[#allocation21_spill] sm:$0xff] }
 0x48c   : > { %v751_v62 = vsel %vm609_vm3, %v728_v44, %v750_v51  ;;  %v1940_v44 = vrot.slane %v4163_v37, %v3367_v21 }
 0x48d   : > { %v673_v49 = vpop.permute.xlu0 %672  ;;  %v752_v1 = vsel %vm611_vm4, %v732_v7, %v751_v62  ;;  %v4164_v62 = vld [vmem:[#allocation22_spill] sm:$0xff]  ;;  %v2547_v7 = vpop.permute.xlu1 %2546 }
 0x48e   : > { %v736_v0 = vrot.slane %v673_v49, %v3367_v21  ;;  %v1948_v27 = vrot.slane %v4164_v62, %v3367_v21  ;;  %v4165_v49 = vld [vmem:[#allocation23_spill] sm:$0xff] }
 0x490   : > { %v753_v25 = vsel %vm613_vm5, %v736_v0, %v752_v1  ;;  %v1952_v0 = vrot.slane %v4165_v49, %v3367_v21 }
 0x491   : > { %v754_v9 = vsel %vm615_vm6, %v740_v54, %v753_v25  ;;  %v1265_v26 = vpop.permute.xlu0 %1264 }
 0x492   : > { %2762 = vst.msk [vmem:[%s3385_s17 + $0x18] sm:$0xff] %vm626_vm7, %v754_v9  ;;  %v1315_v60 = vrot.slane %v1265_v26, %v3533_v3  ;;  %v4166_v26 = vld [vmem:[#allocation24_spill] sm:$0xff] }
 0x493   : > { %v1960_v57 = vrot.slane %v4166_v26, %v3367_v21 }
 0x494   : > { %v1372_v17 = vsel %vm603_vm0, %v1315_v60, %v1311_v56  ;;  %v2550_v60 = vpop.permute.xlu1 %2549 }
 0x495   : > { %v1373_v2 = vsel %vm605_vm1, %v1319_v15, %v1372_v17  ;;  %v1274_v19 = vpop.permute.xlu0 %1273  ;;  %v2609_v37 = vrot.slane %v2550_v60, %v3533_v3 }
 0x496   : > { %v1374_v33 = vsel %vm607_vm2, %v1323_v39, %v1373_v2  ;;  %v1327_v28 = vrot.slane %v1274_v19, %v3533_v3  ;;  %v4167_v39 = vld [vmem:[#allocation25_spill] sm:$0xff] }
 0x497   : > { %v1968_v17 = vrot.slane %v4167_v39, %v3367_v21 }
 0x498   : > { %v1375_v61 = vsel %vm609_vm3, %v1327_v28, %v1374_v33  ;;  %v2553_v28 = vpop.permute.xlu1 %2552 }
 0x499   : > { %v1280_v35 = vpop.permute.xlu0 %1279  ;;  %v1376_v10 = vsel %vm611_vm4, %v1331_v53, %v1375_v61  ;;  %v1976_v53 = vrot.slane %v4168_v63, %v3367_v21  ;;  %v2613_v62 = vrot.slane %v2553_v28, %v3533_v3 }
 0x49a   : > { %v1335_v46 = vrot.slane %v1280_v35, %v3533_v3 }
 0x49c   : > { %v1377_v23 = vsel %vm613_vm5, %v1335_v46, %v1376_v10 }
 0x49d   : > { %v1378_v18 = vsel %vm615_vm6, %v1339_v41, %v1377_v23  ;;  %v1286_v12 = vpop.permute.xlu0 %1285  ;;  %v1984_v41 = vrot.slane %v4169_v42, %v3367_v21 }
 0x49e   : > { %2763 = vst.msk [vmem:[%s3385_s17 + $0x10] sm:$0xff] %vm1257_vm8, %v1378_v18  ;;  %v1343_v45 = vrot.slane %v1286_v12, %v3533_v3  ;;  %v2556_v18 = vpop.permute.xlu1 %2555 }
 0x49f   : > { %v2617_v49 = vrot.slane %v2556_v18, %v3533_v3 }
 0x4a0   : > { %v1379_v50 = vsel %vm603_vm0, %v1347_v29, %v1343_v45  ;;  %v4170_v29 = vld [vmem:[#allocation28_spill] sm:$0xff] }
 0x4a1   : > { %v1292_v16 = vpop.permute.xlu0 %1291 }
 0x4a2   : > { %v1351_v38 = vrot.slane %v1292_v16, %v3533_v3  ;;  %v1992_v16 = vrot.slane %v4170_v29, %v3367_v21 }
 0x4a4   : > { %v1380_v24 = vsel %vm605_vm1, %v1351_v38, %v1379_v50 }
 0x4a5   : > { %v1298_v30 = vpop.permute.xlu0 %1297  ;;  %v1381_v55 = vsel %vm607_vm2, %v1355_v40, %v1380_v24  ;;  %v4171_v40 = vld [vmem:[#allocation29_spill] sm:$0xff] }
 0x4a6   : > { %v1359_v14 = vrot.slane %v1298_v30, %v3533_v3  ;;  %v2000_v30 = vrot.slane %v4171_v40, %v3367_v21 }
 0x4a8   : > { %v1382_v22 = vsel %vm609_vm3, %v1359_v14, %v1381_v55  ;;  %v2559_v14 = vpop.permute.xlu1 %2558 }
 0x4a9   : > { %v1304_v48 = vpop.permute.xlu0 %1303  ;;  %v1383_v13 = vsel %vm611_vm4, %v1363_v36, %v1382_v22 }
 0x4aa   : > { %v1367_v6 = vrot.slane %v1304_v48, %v3533_v3 }
 0x4ac   : > { %v1384_v5 = vsel %vm613_vm5, %v1367_v6, %v1383_v13  ;;  %v2538_v36 = vpop.permute.xlu1 %2537 }
 0x4ad   : > { %v1385_v34 = vsel %vm615_vm6, %v1371_v58, %v1384_v5  ;;  %v1894_v31 = vpop.permute.xlu0 %1893 }
 0x4ae   : > { %2764 = vst.msk [vmem:[%s3385_s17 + $0x18] sm:$0xff] %vm1257_vm8, %v1385_v34  ;;  %v1944_v51 = vrot.slane %v1894_v31, %v3367_v21  ;;  %v2605_v34 = vrot.slane %v2547_v7, %v3533_v3 }
 0x4b0   : > { %v2001_v4 = vsel %vm603_vm0, %v1944_v51, %v1940_v44  ;;  %v2562_v52 = vpop.permute.xlu1 %2561  ;;  %v2601_v51 = vrot.slane %v3969_v43, %v3533_v3 }
 0x4b1   : > { %v2002_v54 = vsel %vm605_vm1, %v1948_v27, %v2001_v4  ;;  %v1903_v1 = vpop.permute.xlu0 %1902  ;;  %v2625_v26 = vrot.slane %v2562_v52, %v3533_v3 }
 0x4b2   : > { %v2003_v25 = vsel %vm607_vm2, %v1952_v0, %v2002_v54  ;;  %v1956_v9 = vrot.slane %v1903_v1, %v3367_v21  ;;  %v2637_v4 = vsel %vm603_vm0, %v2605_v34, %v2601_v51  ;;  %v2621_v54 = vrot.slane %v2559_v14, %v3533_v3 }
 0x4b3   : > { %v2638_v43 = vsel %vm605_vm1, %v2609_v37, %v2637_v4 }
 0x4b4   : > { %v2004_v56 = vsel %vm609_vm3, %v1956_v9, %v2003_v25  ;;  %v2593_v9 = vrot.slane %v2538_v36, %v3533_v3 }
 0x4b5   : > { %v2005_v20 = vsel %vm611_vm4, %v1960_v57, %v2004_v56  ;;  %v1909_v15 = vpop.permute.xlu0 %1908  ;;  %v2639_v56 = vsel %vm607_vm2, %v2613_v62, %v2638_v43 }
 0x4b6   : > { %v1964_v8 = vrot.slane %v1909_v15, %v3367_v21  ;;  %v2640_v15 = vsel %vm609_vm3, %v2617_v49, %v2639_v56 }
 0x4b8   : > { %v2006_v2 = vsel %vm613_vm5, %v1964_v8, %v2005_v20 }
 0x4b9   : > { %v2007_v19 = vsel %vm615_vm6, %v1968_v17, %v2006_v2  ;;  %v1915_v33 = vpop.permute.xlu0 %1914  ;;  %v2641_v17 = vsel %vm611_vm4, %v2621_v54, %v2640_v15 }
 0x4ba   : > { %2767 = vst.msk [vmem:[%s3385_s17 + $0x30] sm:$0xff] %vm626_vm7, %v2007_v19  ;;  %v1972_v61 = vrot.slane %v1915_v33, %v3367_v21  ;;  %v2642_v33 = vsel %vm613_vm5, %v2625_v26, %v2641_v17 }
 0x4bc   : > { %v2008_v10 = vsel %vm603_vm0, %v1976_v53, %v1972_v61 }
 0x4bd   : > { %v1921_v35 = vpop.permute.xlu0 %1920 }
 0x4be   : > { %v1980_v46 = vrot.slane %v1921_v35, %v3367_v21 }
 0x4c0   : > { %v2009_v23 = vsel %vm605_vm1, %v1980_v46, %v2008_v10 }
 0x4c1   : > { %v2010_v12 = vsel %vm607_vm2, %v1984_v41, %v2009_v23  ;;  %v1927_v45 = vpop.permute.xlu0 %1926 }
 0x4c2   : > { %v1988_v11 = vrot.slane %v1927_v45, %v3367_v21 }
 0x4c4   : > { %v2011_v38 = vsel %vm609_vm3, %v1988_v11, %v2010_v12 }
 0x4c5   : > { %v2012_v50 = vsel %vm611_vm4, %v1992_v16, %v2011_v38  ;;  %v1933_v24 = vpop.permute.xlu0 %1932 }
 0x4c6   : > { %v1996_v59 = vrot.slane %v1933_v24, %v3367_v21  ;;  %v2569_v21 = vrot.slane %v3958_v47, %v3533_v3  ;;  %v2541_v47 = vpop.permute.xlu1 %2540 }
 0x4c7   : > { %v2597_v60 = vrot.slane %v2541_v47, %v3533_v3 }
 0x4c8   : > { %v2013_v55 = vsel %vm613_vm5, %v1996_v59, %v2012_v50 }
 0x4c9   : > { %v2014_v22 = vsel %vm615_vm6, %v2000_v30, %v2013_v55  ;;  %v2523_v32 = vpop.permute.xlu0 %2522 }
 0x4ca   : > { %2768 = vst.msk [vmem:[%s3385_s17 + $0x38] sm:$0xff] %vm626_vm7, %v2014_v22  ;;  %v2573_v58 = vrot.slane %v2523_v32, %v3533_v3 }
 0x4cc   : > { %v2630_v27 = vsel %vm603_vm0, %v2573_v58, %v2569_v21 }
 0x4cd   : > { %v2526_v48 = vpop.permute.xlu0 %2525 }
 0x4ce   : > { %v2577_v13 = vrot.slane %v2526_v48, %v3533_v3 }
 0x4d0   : > { %v2631_v7 = vsel %vm605_vm1, %v2577_v13, %v2630_v27 }
 0x4d1   : > { %v2529_v6 = vpop.permute.xlu0 %2528 }
 0x4d2   : > { %v2581_v31 = vrot.slane %v2529_v6, %v3533_v3 }
 0x4d4   : > { %v2632_v1 = vsel %vm607_vm2, %v2581_v31, %v2631_v7 }
 0x4d5   : > { %v2532_v5 = vpop.permute.xlu0 %2531 }
 0x4d6   : > { %v2585_v44 = vrot.slane %v2532_v5, %v3533_v3 }
 0x4d8   : > { %v2633_v57 = vsel %vm609_vm3, %v2585_v44, %v2632_v1 }
 0x4d9   : > { %v2535_v0 = vpop.permute.xlu0 %2534 }
 0x4da   : > { %v2589_v25 = vrot.slane %v2535_v0, %v3533_v3 }
 0x4dc   : > { %v2634_v20 = vsel %vm611_vm4, %v2589_v25, %v2633_v57 }
 0x4dd   : > { %v2635_v8 = vsel %vm613_vm5, %v2593_v9, %v2634_v20  ;;  %v2565_v39 = vpop.permute.xlu0 %2564 }
 0x4de   : > { %v2636_v2 = vsel %vm615_vm6, %v2597_v60, %v2635_v8  ;;  %v2629_v19 = vrot.slane %v2565_v39, %v3533_v3 }
 0x4df   : > { %2771 = vst.msk [vmem:[%s3385_s17 + $0x30] sm:$0xff] %vm1257_vm8, %v2636_v2 }
 0x4e0   : > { %v2643_v28 = vsel %vm615_vm6, %v2629_v19, %v2642_v33 }
 0x4e1   : > { %2772 = vst.msk [vmem:[%s3385_s17 + $0x38] sm:$0xff] %vm1257_vm8, %v2643_v28 }
 0x4e2   : > { %2913 = shalt.err (!%p2910_p5)
}
 0x4e3   : > { %s2914_s30 = scalar_lea.hbm %s4057_s28, 1024  ;;  %s2918_s12 = scalar_lea.hbm %s4115_s1, 2048 }
 0x4e4   : > { %p2915_p4 = scmp.ne.s32.totalorder %s4057_s28, %s2914_s30  ;;  %p2919_p12 = scmp.lt.u32.totalorder %s4057_s28, %s4115_s1 }
 0x4e5   : > { %p2920_p1 = scmp.lt.u32.totalorder %s2918_s12, %s2914_s30  ;;  %p2922_p8 = scmp.lt.u32.totalorder %s2914_s30, %s4057_s28 }
 0x4e6   : > { %p2916_p7 = pnand %p2915_p4, %p4172_p9 }
 0x4e7   : > { %p2921_p3 = por %p2920_p1, %p2919_p12 }
 0x4e8   : > { %p2917_p10 = pneg %p2916_p7 }
 0x4e9   : > { %p2923_p11 = por %p2922_p8, %p2921_p3 }
 0x4eb   : > { %p2924_p0 = pnand %p2923_p11, %p2917_p10 }
 0x4ed   : > { %2927 = shalt.err (!%p2924_p0)
}
 0x4ee   : > { %s3002_s16 = smov 128   ;;  %s3003_s17 = smov 8  }
 0x4ef   : > { %2782 = dma.vmem_to_hbm [thread:$0]  (%p4172_p9), %s4059_s24, 1024, %s4057_s28, %s2649_s3, %s3002_s16, %s3002_s16, %s3003_s17  }
 0x4f0 PF: > { %s2679_s22 = sand.u32 1, %s2962_s6   ;;  %p4173_p6 = scmp.ne.s32.totalorder %s4123_s21, 0 }
 0x4f1   : > { %p4174_p13 = scmp.ge.s32.totalorder %s2982_s11, 2  ;;  %s2680_s23 = scalar_lea.sflag [#allocation4], %s2679_s22 }
 0x4f3   : > { %p2789_p2 = pnand %p4174_p13, %p4173_p6 }
 0x4f5   : > { %2957 = dma.done.wait (!%p2789_p2), %s2680_s23, 1024  }
 0x4f6   : > { %2959 = vsyncadd (!%p2789_p2), %s2680_s23, 4294966272  ;;  %s17_s11 = sadd.s32 1, %s2982_s11   ;;  %s4175_s6 = smov %s2966_s7 }
 0x4f7   : > { %p14_p5 = scmp.ge.s32.totalorder %s17_s11, 4   ;;  %s4176_s7 = smov %s2970_s8 }
 0x4f8   : > { %s4177_s8 = smov %s3070_s20  ;;  %s4178_s9 = smov %s2978_s10 }
 0x4f9   : > { %s4179_s10 = smov %s4181_s14  ;;  %16 = sbr.rel (!%p14_p5) target bundleno = 6 (0x6), region = 72 }
 0x500   :  { %2685 = vsyncpa [#allocation3], 1 }
 0x501   :  { %2687 = vsyncpa [#allocation3 + $0x1], 1 }
 0x502   :  { %2688 = vsyncpa [#allocation4], 1 }
 0x503   :  { %2690 = vsyncpa [#allocation4 + $0x1], 1 }

</bundles_post_ra>
